<compile_context>
chip_gen: v7x
topology: tpu7x:2x2x1
jax: 0.10.0
libtpu: 0.0.40
codegen_flags: <defaults>
</compile_context>

<pallas_src>
import functools

import numpy as np
import jax
import jax.numpy as jnp
from jax import lax
from jax.experimental import pallas as pl
from jax.experimental.pallas import tpu as pltpu


# ----------------------------------------------------------------------------
# In-kernel GroupNorm in (C, P) layout.
#   y:        (C, P) activations for one sample (f32)
#   m_scaled: (C, C) block-diagonal group-membership matrix already scaled by
#             1/(group_size * P)
#   gamma/beta: (C, 1)
# Single stat matmul: (C,C) @ (C,2) -> [group mean, group E[y^2]].
# ----------------------------------------------------------------------------
def _group_norm_cp(y, m_scaled, gamma, beta, eps=1e-5):
    s = jnp.sum(y, axis=1, keepdims=True)                    # (C, 1)
    ss = jnp.sum(y * y, axis=1, keepdims=True)               # (C, 1)
    stats = jnp.dot(m_scaled, jnp.concatenate([s, ss], axis=1),
                    preferred_element_type=jnp.float32)      # (C, 2)
    mean = stats[:, 0:1]
    var = stats[:, 1:2] - mean * mean                        # biased group var
    scale = gamma * lax.rsqrt(var + eps)                      # (C, 1)
    shift = beta - mean * scale                               # (C, 1)
    return y * scale + shift                                  # 1 mul + 1 add on (C,P)


# ----------------------------------------------------------------------------
# Pallas kernel: S samples per grid step, everything in (C, P) layout.
# ----------------------------------------------------------------------------
def bottleneck_kernel(x_ref, w1_ref, w2_ref, w3_ref, pmid_ref, pout_ref,
                      mmid_ref, mout_ref, cmask_ref, o_ref, slab_ref,
                      *, H, W, C_mid, S):
    P = H * W

    # Hoist all replicated loads out of the per-sample loop.
    w1 = w1_ref[...]                               # (C_mid, C_in)     bf16
    w2 = w2_ref[...]                               # (C_mid, 9*C_mid)  bf16
    w3 = w3_ref[...]                               # (C_out, C_mid)    bf16
    pmid = pmid_ref[...]                           # (C_mid, 6) f32
    pout = pout_ref[...]                           # (C_out, 3) f32
    b1, g1w, g1b = pmid[:, 0:1], pmid[:, 1:2], pmid[:, 2:3]
    b2, g2w, g2b = pmid[:, 3:4], pmid[:, 4:5], pmid[:, 5:6]
    b3, g3w, g3b = pout[:, 0:1], pout[:, 1:2], pout[:, 2:3]
    m_mid = mmid_ref[...]                          # (C_mid, C_mid) f32
    m_out = mout_ref[...]                          # (C_out, C_out) f32
    cmask = cmask_ref[...]                         # (9, P) 0/1 f32

    for s in range(S):                             # unrolled (S is static, small)
        x = x_ref[s]                               # (C_in, P) f32

        # --- conv1: 1x1 conv == (C_mid, C_in) @ (C_in, P), bf16 MXU -----------
        y = jnp.dot(w1, x.astype(jnp.bfloat16),
                    preferred_element_type=jnp.float32) + b1
        y = _group_norm_cp(y, m_mid, g1w, g1b)
        y = jnp.maximum(y, 0.0)

        # --- conv2: 3x3 conv (padding=1, stride=1) as ONE K=9*C_mid matmul ----
        # Build the im2col slab tap-by-tap into VMEM scratch (bounds vreg live
        # ranges).  Tap (dh, dw) reads source pixel p + (dh-1)*W + (dw-1);
        # wrap-around / out-of-image taps are zeroed by precomputed masks.
        for dh in range(3):
            for dw in range(3):
                t = dh * 3 + dw
                off = (dh - 1) * W + (dw - 1)
                if off == 0:
                    part = y                                      # center tap
                else:
                    part = pltpu.roll(y, shift=(-off) % P, axis=1) \
                        * cmask[t:t + 1, :]
                slab_ref[pl.ds(t * C_mid, C_mid), :] = part
        slab = slab_ref[...].astype(jnp.bfloat16)                 # (9*C_mid, P)
        y = jnp.dot(w2, slab, preferred_element_type=jnp.float32) + b2
        y = _group_norm_cp(y, m_mid, g2w, g2b)
        y = jnp.maximum(y, 0.0)

        # --- conv3: 1x1 conv == (C_out, C_mid) @ (C_mid, P), bf16 MXU ---------
        y = jnp.dot(w3, y.astype(jnp.bfloat16),
                    preferred_element_type=jnp.float32) + b3
        y = _group_norm_cp(y, m_out, g3w, g3b)
        y = jnp.maximum(y, 0.0)

        # --- residual + final ReLU (stride=1 -> identity shortcut) ------------
        o_ref[s] = jnp.maximum(x + y, 0.0)


def _samples_per_step(N):
    """One sample per grid step on multi-TC v7x (parallel grid axis maps
    samples to cores); fold the batch into one step on single-TC v5e/v6e."""
    try:
        kind = jax.devices()[0].device_kind.lower()
    except Exception:
        kind = ""
    if "v7" in kind:
        return 1
    return N if N <= 8 else 1


# ----------------------------------------------------------------------------
# Wrapper: host-side packing / precompute, BlockSpecs, pallas_call.
# Input / output are NCHW (matching the PyTorch module).
# ----------------------------------------------------------------------------
def bottleneck_forward(x_nchw, params, *, planes, num_groups):
    N, C_in, H, W = x_nchw.shape
    P = H * W
    C_mid = planes // 4
    C_out = planes
    assert C_in == C_out, "stride=1 bottleneck requires in_planes == planes"

    x = x_nchw.reshape(N, C_in, P)                               # lane-dense

    # Weights -> matmul forms for the (C, P) layout, pre-cast to bf16 (MXU
    # native path on v6e/v7x); accumulation stays f32 inside the kernel.
    w1t = params["w1"].reshape(C_in, C_mid).T.astype(jnp.bfloat16)
    w2r = params["w2"].transpose(3, 0, 1, 2).reshape(C_mid, 9 * C_mid)
    w2r = w2r.astype(jnp.bfloat16)
    w3t = params["w3"].reshape(C_mid, C_out).T.astype(jnp.bfloat16)

    # Packed per-channel params (columns: b, gamma, beta [, b2, gamma2, beta2]).
    pmid = jnp.stack([params["b1"], params["g1w"], params["g1b"],
                      params["b2"], params["g2w"], params["g2b"]], axis=1)
    pout = jnp.stack([params["b3"], params["g3w"], params["g3b"]], axis=1)

    # Scaled block-diagonal group-membership matrices for GroupNorm.
    def gn_matrix(C):
        gs = C // num_groups
        rows = np.arange(C)[:, None] // gs
        cols = np.arange(C)[None, :] // gs
        return jnp.asarray(((rows == cols).astype(np.float32)) / float(gs * P))

    m_mid = gn_matrix(C_mid)                                     # (C_mid, C_mid)
    m_out = gn_matrix(C_out)                                     # (C_out, C_out)

    # 3x3-conv tap validity masks on the flattened pixel axis, (9, P) float.
    hh, ww = np.meshgrid(np.arange(H), np.arange(W), indexing="ij")
    hh, ww = hh.reshape(-1), ww.reshape(-1)
    masks = []
    for dh in range(3):
        for dw in range(3):
            vh = (hh + dh - 1 >= 0) & (hh + dh - 1 < H)
            vw = (ww + dw - 1 >= 0) & (ww + dw - 1 < W)
            masks.append((vh & vw).astype(np.float32))
    cmask = jnp.asarray(np.stack(masks, axis=0))                 # (9, P)

    S = _samples_per_step(N)
    assert N % S == 0
    kernel = functools.partial(bottleneck_kernel, H=H, W=W, C_mid=C_mid, S=S)

    def rep(shape):  # replicated (weight-like) input across the batch grid
        nd = len(shape)
        return pl.BlockSpec(shape, lambda n, _nd=nd: (0,) * _nd)

    grid_spec = pltpu.PrefetchScalarGridSpec(
        num_scalar_prefetch=0,
        grid=(N // S,),
        in_specs=[
            pl.BlockSpec((S, C_in, P), lambda n: (n, 0, 0)),     # x
            rep((C_mid, C_in)),                                  # w1t (bf16)
            rep((C_mid, 9 * C_mid)),                             # w2r (bf16)
            rep((C_out, C_mid)),                                 # w3t (bf16)
            rep((C_mid, 6)),                                     # packed mid params
            rep((C_out, 3)),                                     # packed out params
            rep((C_mid, C_mid)),                                 # GN matrix (mid)
            rep((C_out, C_out)),                                 # GN matrix (out)
            rep((9, P)),                                         # conv tap masks
        ],
        out_specs=pl.BlockSpec((S, C_out, P), lambda n: (n, 0, 0)),
        scratch_shapes=[pltpu.VMEM((9 * C_mid, P), jnp.float32)],  # im2col slab
    )

    flops = 2 * N * P * (C_in * C_mid + 9 * C_mid * C_mid + C_mid * C_out)
    bytes_accessed = (4 * (x.size + N * C_out * P + pmid.size + pout.size
                           + m_mid.size + m_out.size + cmask.size)
                      + 2 * (w1t.size + w2r.size + w3t.size))
    cost = pl.CostEstimate(flops=int(flops),
                           transcendentals=int(N * (2 * C_mid + C_out)),
                           bytes_accessed=int(bytes_accessed))

    out = pl.pallas_call(
        kernel,
        out_shape=jax.ShapeDtypeStruct((N, C_out, P), jnp.float32),
        grid_spec=grid_spec,
        compiler_params=pltpu.CompilerParams(
            dimension_semantics=("parallel",),
            vmem_limit_bytes=32 * 1024 * 1024),
        cost_estimate=cost,
    )(x, w1t, w2r, w3t, pmid, pout, m_mid, m_out, cmask)

    return out.reshape(N, C_out, H, W)


# ----------------------------------------------------------------------------
# Pure-JAX reference (NCHW), for correctness check only.
# ----------------------------------------------------------------------------
def reference_forward(x, p, *, planes, num_groups, eps=1e-5):
    def gn(y, w, b):
        N, C, H, W = y.shape
        yr = y.reshape(N, num_groups, C // num_groups, H, W)
        mean = yr.mean(axis=(2, 3, 4), keepdims=True)
        var = ((yr - mean) ** 2).mean(axis=(2, 3, 4), keepdims=True)
        yn = ((yr - mean) / jnp.sqrt(var + eps)).reshape(N, C, H, W)
        return yn * w.reshape(1, C, 1, 1) + b.reshape(1, C, 1, 1)

    def conv(y, w, b, pad):
        out = lax.conv_general_dilated(
            y, w, window_strides=(1, 1), padding=((pad, pad), (pad, pad)),
            dimension_numbers=("NCHW", "HWIO", "NCHW"),
            precision=lax.Precision.HIGHEST)
        return out + b.reshape(1, -1, 1, 1)

    y = jax.nn.relu(gn(conv(x, p["w1"], p["b1"], 0), p["g1w"], p["g1b"]))
    y = jax.nn.relu(gn(conv(y, p["w2"], p["b2"], 1), p["g2w"], p["g2b"]))
    y = jax.nn.relu(gn(conv(y, p["w3"], p["b3"], 0), p["g3w"], p["g3b"]))
    return jax.nn.relu(x + y)


# ----------------------------------------------------------------------------
# Deterministic parameter init (shapes follow the nn.Module __init__).
# ----------------------------------------------------------------------------
def init_params(key, in_planes, planes):
    c_mid, c_out = planes // 4, planes
    ks = jax.random.split(key, 12)
    n = jax.random.normal
    return {
        # conv weights in HWIO layout
        "w1": 0.2 * n(ks[0], (1, 1, in_planes, c_mid), jnp.float32),
        "b1": 0.1 * n(ks[1], (c_mid,), jnp.float32),
        "w2": 0.2 * n(ks[2], (3, 3, c_mid, c_mid), jnp.float32),
        "b2": 0.1 * n(ks[3], (c_mid,), jnp.float32),
        "w3": 0.2 * n(ks[4], (1, 1, c_mid, c_out), jnp.float32),
        "b3": 0.1 * n(ks[5], (c_out,), jnp.float32),
        # GroupNorm affine params
        "g1w": 1.0 + 0.1 * n(ks[6], (c_mid,), jnp.float32),
        "g1b": 0.1 * n(ks[7], (c_mid,), jnp.float32),
        "g2w": 1.0 + 0.1 * n(ks[8], (c_mid,), jnp.float32),
        "g2b": 0.1 * n(ks[9], (c_mid,), jnp.float32),
        "g3w": 1.0 + 0.1 * n(ks[10], (c_out,), jnp.float32),
        "g3b": 0.1 * n(ks[11], (c_out,), jnp.float32),
    }


if __name__ == "__main__":
    # Small shapes: batch=2, in_planes=planes=32, 16x16 spatial, stride=1.
    N, H, W = 2, 16, 16
    in_planes = planes = 32
    num_groups = planes // 8            # GroupNorm(num_groups=planes//8)

    key = jax.random.PRNGKey(0)
    k_x, k_p = jax.random.split(key)
    x = jax.random.normal(k_x, (N, in_planes, H, W), jnp.float32)   # NCHW
    params = init_params(k_p, in_planes, planes)

    out = bottleneck_forward(x, params, planes=planes, num_groups=num_groups)
    out = jax.block_until_ready(out)

    ref = jax.block_until_ready(
        reference_forward(x, params, planes=planes, num_groups=num_groups))

    assert out.shape == (N, planes, H, W)
    # bf16 MXU operands (f32 accumulation) loosen the tolerance vs. the pure
    # f32 path, which matched at 1e-2; a wrong kernel errs at O(0.1-1).
    assert bool(jnp.allclose(out, ref, atol=3e-2, rtol=3e-2)), (
        "Pallas output mismatch vs JAX reference")
    print("KERNEL_OK")
</pallas_src>

<mosaic_0001>
module attributes {stable_mosaic.version = 11 : i64} {
  func.func @bottleneck_kernel(%arg0: i32, %arg1: memref<2x32x256xf32, #tpu.memory_space<vmem>>, %arg2: memref<8x32xbf16, #tpu.memory_space<vmem>>, %arg3: memref<8x72xbf16, #tpu.memory_space<vmem>>, %arg4: memref<32x8xbf16, #tpu.memory_space<vmem>>, %arg5: memref<8x6xf32, #tpu.memory_space<vmem>>, %arg6: memref<32x3xf32, #tpu.memory_space<vmem>>, %arg7: memref<8x8xf32, #tpu.memory_space<vmem>>, %arg8: memref<32x32xf32, #tpu.memory_space<vmem>>, %arg9: memref<9x256xf32, #tpu.memory_space<vmem>>, %arg10: memref<2x32x256xf32, #tpu.memory_space<vmem>>, %arg11: memref<72x256xf32, #tpu.memory_space<vmem>>) attributes {dimension_semantics = [#tpu.dimension_semantics<parallel>], iteration_bounds = array<i64: 1>, scalar_prefetch = 0 : i64, scratch_operands = 1 : i64, tpu.core_type = #tpu.core_type<tc>, window_params = [{transform_indices = @transform_0, window_bounds = array<i64: 2, 32, 256>}, {pipeline_mode = #tpu.pipeline_mode<synchronous>, transform_indices = @transform_1, window_bounds = array<i64: 8, 32>}, {pipeline_mode = #tpu.pipeline_mode<synchronous>, transform_indices = @transform_2, window_bounds = array<i64: 8, 72>}, {pipeline_mode = #tpu.pipeline_mode<synchronous>, transform_indices = @transform_3, window_bounds = array<i64: 32, 8>}, {pipeline_mode = #tpu.pipeline_mode<synchronous>, transform_indices = @transform_4, window_bounds = array<i64: 8, 6>}, {pipeline_mode = #tpu.pipeline_mode<synchronous>, transform_indices = @transform_5, window_bounds = array<i64: 32, 3>}, {pipeline_mode = #tpu.pipeline_mode<synchronous>, transform_indices = @transform_6, window_bounds = array<i64: 8, 8>}, {pipeline_mode = #tpu.pipeline_mode<synchronous>, transform_indices = @transform_7, window_bounds = array<i64: 32, 32>}, {pipeline_mode = #tpu.pipeline_mode<synchronous>, transform_indices = @transform_8, window_bounds = array<i64: 9, 256>}, {transform_indices = @transform_9, window_bounds = array<i64: 2, 32, 256>}]} {
    %c0 = arith.constant 0 : index
    %c0_0 = arith.constant 0 : index
    %0 = vector.load %arg2[%c0, %c0_0] : memref<8x32xbf16, #tpu.memory_space<vmem>>, vector<8x32xbf16>
    %c0_1 = arith.constant 0 : index
    %c0_2 = arith.constant 0 : index
    %1 = vector.load %arg3[%c0_1, %c0_2] : memref<8x72xbf16, #tpu.memory_space<vmem>>, vector<8x72xbf16>
    %c0_3 = arith.constant 0 : index
    %c0_4 = arith.constant 0 : index
    %2 = vector.load %arg4[%c0_3, %c0_4] : memref<32x8xbf16, #tpu.memory_space<vmem>>, vector<32x8xbf16>
    %c0_5 = arith.constant 0 : index
    %c0_6 = arith.constant 0 : index
    %3 = vector.load %arg5[%c0_5, %c0_6] : memref<8x6xf32, #tpu.memory_space<vmem>>, vector<8x6xf32>
    %c0_7 = arith.constant 0 : index
    %c0_8 = arith.constant 0 : index
    %4 = vector.load %arg6[%c0_7, %c0_8] : memref<32x3xf32, #tpu.memory_space<vmem>>, vector<32x3xf32>
    %5 = vector.extract_strided_slice %3 {offsets = [0, 0], sizes = [8, 1], strides = [1, 1]} : vector<8x6xf32> to vector<8x1xf32>
    %6 = vector.extract_strided_slice %3 {offsets = [0, 1], sizes = [8, 1], strides = [1, 1]} : vector<8x6xf32> to vector<8x1xf32>
    %7 = vector.extract_strided_slice %3 {offsets = [0, 2], sizes = [8, 1], strides = [1, 1]} : vector<8x6xf32> to vector<8x1xf32>
    %8 = vector.extract_strided_slice %3 {offsets = [0, 3], sizes = [8, 1], strides = [1, 1]} : vector<8x6xf32> to vector<8x1xf32>
    %9 = vector.extract_strided_slice %3 {offsets = [0, 4], sizes = [8, 1], strides = [1, 1]} : vector<8x6xf32> to vector<8x1xf32>
    %10 = vector.extract_strided_slice %3 {offsets = [0, 5], sizes = [8, 1], strides = [1, 1]} : vector<8x6xf32> to vector<8x1xf32>
    %11 = vector.extract_strided_slice %4 {offsets = [0, 0], sizes = [32, 1], strides = [1, 1]} : vector<32x3xf32> to vector<32x1xf32>
    %12 = vector.extract_strided_slice %4 {offsets = [0, 1], sizes = [32, 1], strides = [1, 1]} : vector<32x3xf32> to vector<32x1xf32>
    %13 = vector.extract_strided_slice %4 {offsets = [0, 2], sizes = [32, 1], strides = [1, 1]} : vector<32x3xf32> to vector<32x1xf32>
    %c0_9 = arith.constant 0 : index
    %c0_10 = arith.constant 0 : index
    %14 = vector.load %arg7[%c0_9, %c0_10] : memref<8x8xf32, #tpu.memory_space<vmem>>, vector<8x8xf32>
    %c0_11 = arith.constant 0 : index
    %c0_12 = arith.constant 0 : index
    %15 = vector.load %arg8[%c0_11, %c0_12] : memref<32x32xf32, #tpu.memory_space<vmem>>, vector<32x32xf32>
    %c0_13 = arith.constant 0 : index
    %c0_14 = arith.constant 0 : index
    %16 = vector.load %arg9[%c0_13, %c0_14] : memref<9x256xf32, #tpu.memory_space<vmem>>, vector<9x256xf32>
    %c0_15 = arith.constant 0 : index
    %c0_16 = arith.constant 0 : index
    %c0_17 = arith.constant 0 : index
    %17 = vector.load %arg1[%c0_15, %c0_16, %c0_17] : memref<2x32x256xf32, #tpu.memory_space<vmem>>, vector<1x32x256xf32>
    %18 = vector.shape_cast %17 : vector<1x32x256xf32> to vector<32x256xf32>
    %19 = arith.truncf %18 : vector<32x256xf32> to vector<32x256xbf16>
    %cst = arith.constant dense<0.000000e+00> : vector<8x256xf32>
    %20 = tpu.matmul %0, %19, %cst {dimension_numbers = #tpu.dot_dimension_numbers<[1], [0], [0], [1], [0, 0, 1, 1], [], []>} : vector<8x32xbf16>, vector<32x256xbf16>, vector<8x256xf32> -> vector<8x256xf32>
    %21 = vector.broadcast %5 : vector<8x1xf32> to vector<8x256xf32>
    %22 = arith.addf %20, %21 : vector<8x256xf32>
    %cst_18 = arith.constant dense<0.000000e+00> : vector<8xf32>
    %23 = vector.multi_reduction <add>, %22, %cst_18 [1] : vector<8x256xf32> to vector<8xf32>
    %24 = vector.shape_cast %23 : vector<8xf32> to vector<8x1xf32>
    %25 = arith.mulf %22, %22 : vector<8x256xf32>
    %cst_19 = arith.constant dense<0.000000e+00> : vector<8xf32>
    %26 = vector.multi_reduction <add>, %25, %cst_19 [1] : vector<8x256xf32> to vector<8xf32>
    %27 = vector.shape_cast %26 : vector<8xf32> to vector<8x1xf32>
    %28 = tpu.concatenate %24, %27 in 1 : vector<8x1xf32>, vector<8x1xf32> -> vector<8x2xf32>
    %cst_20 = arith.constant dense<0.000000e+00> : vector<8x2xf32>
    %29 = tpu.matmul %14, %28, %cst_20 {dimension_numbers = #tpu.dot_dimension_numbers<[1], [0], [0], [1], [0, 0, 1, 1], [], []>} : vector<8x8xf32>, vector<8x2xf32>, vector<8x2xf32> -> vector<8x2xf32>
    %30 = vector.extract_strided_slice %29 {offsets = [0, 0], sizes = [8, 1], strides = [1, 1]} : vector<8x2xf32> to vector<8x1xf32>
    %31 = vector.extract_strided_slice %29 {offsets = [0, 1], sizes = [8, 1], strides = [1, 1]} : vector<8x2xf32> to vector<8x1xf32>
    %32 = arith.mulf %30, %30 : vector<8x1xf32>
    %33 = arith.subf %31, %32 : vector<8x1xf32>
    %cst_21 = arith.constant 9.99999974E-6 : f32
    %34 = vector.broadcast %cst_21 : f32 to vector<8x1xf32>
    %35 = arith.addf %33, %34 : vector<8x1xf32>
    %36 = math.rsqrt %35 : vector<8x1xf32>
    %37 = arith.mulf %6, %36 : vector<8x1xf32>
    %38 = arith.mulf %30, %37 : vector<8x1xf32>
    %39 = arith.subf %7, %38 : vector<8x1xf32>
    %40 = vector.broadcast %37 : vector<8x1xf32> to vector<8x256xf32>
    %41 = arith.mulf %22, %40 : vector<8x256xf32>
    %42 = vector.broadcast %39 : vector<8x1xf32> to vector<8x256xf32>
    %43 = arith.addf %41, %42 : vector<8x256xf32>
    %cst_22 = arith.constant 0.000000e+00 : f32
    %44 = vector.broadcast %cst_22 : f32 to vector<8x256xf32>
    %45 = arith.maximumf %43, %44 : vector<8x256xf32>
    %c17_i32 = arith.constant 17 : i32
    %46 = tpu.dynamic_rotate %45 by %c17_i32 dim 1 : vector<8x256xf32>, i32 -> vector<8x256xf32>
    %47 = vector.extract_strided_slice %16 {offsets = [0, 0], sizes = [1, 256], strides = [1, 1]} : vector<9x256xf32> to vector<1x256xf32>
    %48 = vector.broadcast %47 : vector<1x256xf32> to vector<8x256xf32>
    %49 = arith.mulf %46, %48 : vector<8x256xf32>
    %c0_23 = arith.constant 0 : index
    %c0_24 = arith.constant 0 : index
    %50 = vector.load %arg11[%c0_23, %c0_24] : memref<72x256xf32, #tpu.memory_space<vmem>>, vector<8x256xf32>
    tpu.vector_store %arg11[%c0_23, %c0_24], %49 {strides = array<i32>} : memref<72x256xf32, #tpu.memory_space<vmem>>, vector<8x256xf32>,
    %c16_i32 = arith.constant 16 : i32
    %51 = tpu.dynamic_rotate %45 by %c16_i32 dim 1 : vector<8x256xf32>, i32 -> vector<8x256xf32>
    %52 = vector.extract_strided_slice %16 {offsets = [1, 0], sizes = [1, 256], strides = [1, 1]} : vector<9x256xf32> to vector<1x256xf32>
    %53 = vector.broadcast %52 : vector<1x256xf32> to vector<8x256xf32>
    %54 = arith.mulf %51, %53 : vector<8x256xf32>
    %c8 = arith.constant 8 : index
    %c0_25 = arith.constant 0 : index
    %55 = vector.load %arg11[%c8, %c0_25] : memref<72x256xf32, #tpu.memory_space<vmem>>, vector<8x256xf32>
    tpu.vector_store %arg11[%c8, %c0_25], %54 {strides = array<i32>} : memref<72x256xf32, #tpu.memory_space<vmem>>, vector<8x256xf32>,
    %c15_i32 = arith.constant 15 : i32
    %56 = tpu.dynamic_rotate %45 by %c15_i32 dim 1 : vector<8x256xf32>, i32 -> vector<8x256xf32>
    %57 = vector.extract_strided_slice %16 {offsets = [2, 0], sizes = [1, 256], strides = [1, 1]} : vector<9x256xf32> to vector<1x256xf32>
    %58 = vector.broadcast %57 : vector<1x256xf32> to vector<8x256xf32>
    %59 = arith.mulf %56, %58 : vector<8x256xf32>
    %c16 = arith.constant 16 : index
    %c0_26 = arith.constant 0 : index
    %60 = vector.load %arg11[%c16, %c0_26] : memref<72x256xf32, #tpu.memory_space<vmem>>, vector<8x256xf32>
    tpu.vector_store %arg11[%c16, %c0_26], %59 {strides = array<i32>} : memref<72x256xf32, #tpu.memory_space<vmem>>, vector<8x256xf32>,
    %c1_i32 = arith.constant 1 : i32
    %61 = tpu.dynamic_rotate %45 by %c1_i32 dim 1 : vector<8x256xf32>, i32 -> vector<8x256xf32>
    %62 = vector.extract_strided_slice %16 {offsets = [3, 0], sizes = [1, 256], strides = [1, 1]} : vector<9x256xf32> to vector<1x256xf32>
    %63 = vector.broadcast %62 : vector<1x256xf32> to vector<8x256xf32>
    %64 = arith.mulf %61, %63 : vector<8x256xf32>
    %c24 = arith.constant 24 : index
    %c0_27 = arith.constant 0 : index
    %65 = vector.load %arg11[%c24, %c0_27] : memref<72x256xf32, #tpu.memory_space<vmem>>, vector<8x256xf32>
    tpu.vector_store %arg11[%c24, %c0_27], %64 {strides = array<i32>} : memref<72x256xf32, #tpu.memory_space<vmem>>, vector<8x256xf32>,
    %c32 = arith.constant 32 : index
    %c0_28 = arith.constant 0 : index
    %66 = vector.load %arg11[%c32, %c0_28] : memref<72x256xf32, #tpu.memory_space<vmem>>, vector<8x256xf32>
    tpu.vector_store %arg11[%c32, %c0_28], %45 {strides = array<i32>} : memref<72x256xf32, #tpu.memory_space<vmem>>, vector<8x256xf32>,
    %c255_i32 = arith.constant 255 : i32
    %67 = tpu.dynamic_rotate %45 by %c255_i32 dim 1 : vector<8x256xf32>, i32 -> vector<8x256xf32>
    %68 = vector.extract_strided_slice %16 {offsets = [5, 0], sizes = [1, 256], strides = [1, 1]} : vector<9x256xf32> to vector<1x256xf32>
    %69 = vector.broadcast %68 : vector<1x256xf32> to vector<8x256xf32>
    %70 = arith.mulf %67, %69 : vector<8x256xf32>
    %c40 = arith.constant 40 : index
    %c0_29 = arith.constant 0 : index
    %71 = vector.load %arg11[%c40, %c0_29] : memref<72x256xf32, #tpu.memory_space<vmem>>, vector<8x256xf32>
    tpu.vector_store %arg11[%c40, %c0_29], %70 {strides = array<i32>} : memref<72x256xf32, #tpu.memory_space<vmem>>, vector<8x256xf32>,
    %c241_i32 = arith.constant 241 : i32
    %72 = tpu.dynamic_rotate %45 by %c241_i32 dim 1 : vector<8x256xf32>, i32 -> vector<8x256xf32>
    %73 = vector.extract_strided_slice %16 {offsets = [6, 0], sizes = [1, 256], strides = [1, 1]} : vector<9x256xf32> to vector<1x256xf32>
    %74 = vector.broadcast %73 : vector<1x256xf32> to vector<8x256xf32>
    %75 = arith.mulf %72, %74 : vector<8x256xf32>
    %c48 = arith.constant 48 : index
    %c0_30 = arith.constant 0 : index
    %76 = vector.load %arg11[%c48, %c0_30] : memref<72x256xf32, #tpu.memory_space<vmem>>, vector<8x256xf32>
    tpu.vector_store %arg11[%c48, %c0_30], %75 {strides = array<i32>} : memref<72x256xf32, #tpu.memory_space<vmem>>, vector<8x256xf32>,
    %c240_i32 = arith.constant 240 : i32
    %77 = tpu.dynamic_rotate %45 by %c240_i32 dim 1 : vector<8x256xf32>, i32 -> vector<8x256xf32>
    %78 = vector.extract_strided_slice %16 {offsets = [7, 0], sizes = [1, 256], strides = [1, 1]} : vector<9x256xf32> to vector<1x256xf32>
    %79 = vector.broadcast %78 : vector<1x256xf32> to vector<8x256xf32>
    %80 = arith.mulf %77, %79 : vector<8x256xf32>
    %c56 = arith.constant 56 : index
    %c0_31 = arith.constant 0 : index
    %81 = vector.load %arg11[%c56, %c0_31] : memref<72x256xf32, #tpu.memory_space<vmem>>, vector<8x256xf32>
    tpu.vector_store %arg11[%c56, %c0_31], %80 {strides = array<i32>} : memref<72x256xf32, #tpu.memory_space<vmem>>, vector<8x256xf32>,
    %c239_i32 = arith.constant 239 : i32
    %82 = tpu.dynamic_rotate %45 by %c239_i32 dim 1 : vector<8x256xf32>, i32 -> vector<8x256xf32>
    %83 = vector.extract_strided_slice %16 {offsets = [8, 0], sizes = [1, 256], strides = [1, 1]} : vector<9x256xf32> to vector<1x256xf32>
    %84 = vector.broadcast %83 : vector<1x256xf32> to vector<8x256xf32>
    %85 = arith.mulf %82, %84 : vector<8x256xf32>
    %c64 = arith.constant 64 : index
    %c0_32 = arith.constant 0 : index
    %86 = vector.load %arg11[%c64, %c0_32] : memref<72x256xf32, #tpu.memory_space<vmem>>, vector<8x256xf32>
    tpu.vector_store %arg11[%c64, %c0_32], %85 {strides = array<i32>} : memref<72x256xf32, #tpu.memory_space<vmem>>, vector<8x256xf32>,
    %c0_33 = arith.constant 0 : index
    %c0_34 = arith.constant 0 : index
    %87 = vector.load %arg11[%c0_33, %c0_34] : memref<72x256xf32, #tpu.memory_space<vmem>>, vector<72x256xf32>
    %88 = arith.truncf %87 : vector<72x256xf32> to vector<72x256xbf16>
    %cst_35 = arith.constant dense<0.000000e+00> : vector<8x256xf32>
    %89 = tpu.matmul %1, %88, %cst_35 {dimension_numbers = #tpu.dot_dimension_numbers<[1], [0], [0], [1], [0, 0, 1, 1], [], []>} : vector<8x72xbf16>, vector<72x256xbf16>, vector<8x256xf32> -> vector<8x256xf32>
    %90 = vector.broadcast %8 : vector<8x1xf32> to vector<8x256xf32>
    %91 = arith.addf %89, %90 : vector<8x256xf32>
    %cst_36 = arith.constant dense<0.000000e+00> : vector<8xf32>
    %92 = vector.multi_reduction <add>, %91, %cst_36 [1] : vector<8x256xf32> to vector<8xf32>
    %93 = vector.shape_cast %92 : vector<8xf32> to vector<8x1xf32>
    %94 = arith.mulf %91, %91 : vector<8x256xf32>
    %cst_37 = arith.constant dense<0.000000e+00> : vector<8xf32>
    %95 = vector.multi_reduction <add>, %94, %cst_37 [1] : vector<8x256xf32> to vector<8xf32>
    %96 = vector.shape_cast %95 : vector<8xf32> to vector<8x1xf32>
    %97 = tpu.concatenate %93, %96 in 1 : vector<8x1xf32>, vector<8x1xf32> -> vector<8x2xf32>
    %cst_38 = arith.constant dense<0.000000e+00> : vector<8x2xf32>
    %98 = tpu.matmul %14, %97, %cst_38 {dimension_numbers = #tpu.dot_dimension_numbers<[1], [0], [0], [1], [0, 0, 1, 1], [], []>} : vector<8x8xf32>, vector<8x2xf32>, vector<8x2xf32> -> vector<8x2xf32>
    %99 = vector.extract_strided_slice %98 {offsets = [0, 0], sizes = [8, 1], strides = [1, 1]} : vector<8x2xf32> to vector<8x1xf32>
    %100 = vector.extract_strided_slice %98 {offsets = [0, 1], sizes = [8, 1], strides = [1, 1]} : vector<8x2xf32> to vector<8x1xf32>
    %101 = arith.mulf %99, %99 : vector<8x1xf32>
    %102 = arith.subf %100, %101 : vector<8x1xf32>
    %cst_39 = arith.constant 9.99999974E-6 : f32
    %103 = vector.broadcast %cst_39 : f32 to vector<8x1xf32>
    %104 = arith.addf %102, %103 : vector<8x1xf32>
    %105 = math.rsqrt %104 : vector<8x1xf32>
    %106 = arith.mulf %9, %105 : vector<8x1xf32>
    %107 = arith.mulf %99, %106 : vector<8x1xf32>
    %108 = arith.subf %10, %107 : vector<8x1xf32>
    %109 = vector.broadcast %106 : vector<8x1xf32> to vector<8x256xf32>
    %110 = arith.mulf %91, %109 : vector<8x256xf32>
    %111 = vector.broadcast %108 : vector<8x1xf32> to vector<8x256xf32>
    %112 = arith.addf %110, %111 : vector<8x256xf32>
    %cst_40 = arith.constant 0.000000e+00 : f32
    %113 = vector.broadcast %cst_40 : f32 to vector<8x256xf32>
    %114 = arith.maximumf %112, %113 : vector<8x256xf32>
    %115 = arith.truncf %114 : vector<8x256xf32> to vector<8x256xbf16>
    %cst_41 = arith.constant dense<0.000000e+00> : vector<32x256xf32>
    %116 = tpu.matmul %2, %115, %cst_41 {dimension_numbers = #tpu.dot_dimension_numbers<[1], [0], [0], [1], [0, 0, 1, 1], [], []>} : vector<32x8xbf16>, vector<8x256xbf16>, vector<32x256xf32> -> vector<32x256xf32>
    %117 = vector.broadcast %11 : vector<32x1xf32> to vector<32x256xf32>
    %118 = arith.addf %116, %117 : vector<32x256xf32>
    %cst_42 = arith.constant dense<0.000000e+00> : vector<32xf32>
    %119 = vector.multi_reduction <add>, %118, %cst_42 [1] : vector<32x256xf32> to vector<32xf32>
    %120 = vector.shape_cast %119 : vector<32xf32> to vector<32x1xf32>
    %121 = arith.mulf %118, %118 : vector<32x256xf32>
    %cst_43 = arith.constant dense<0.000000e+00> : vector<32xf32>
    %122 = vector.multi_reduction <add>, %121, %cst_43 [1] : vector<32x256xf32> to vector<32xf32>
    %123 = vector.shape_cast %122 : vector<32xf32> to vector<32x1xf32>
    %124 = tpu.concatenate %120, %123 in 1 : vector<32x1xf32>, vector<32x1xf32> -> vector<32x2xf32>
    %cst_44 = arith.constant dense<0.000000e+00> : vector<32x2xf32>
    %125 = tpu.matmul %15, %124, %cst_44 {dimension_numbers = #tpu.dot_dimension_numbers<[1], [0], [0], [1], [0, 0, 1, 1], [], []>} : vector<32x32xf32>, vector<32x2xf32>, vector<32x2xf32> -> vector<32x2xf32>
    %126 = vector.extract_strided_slice %125 {offsets = [0, 0], sizes = [32, 1], strides = [1, 1]} : vector<32x2xf32> to vector<32x1xf32>
    %127 = vector.extract_strided_slice %125 {offsets = [0, 1], sizes = [32, 1], strides = [1, 1]} : vector<32x2xf32> to vector<32x1xf32>
    %128 = arith.mulf %126, %126 : vector<32x1xf32>
    %129 = arith.subf %127, %128 : vector<32x1xf32>
    %cst_45 = arith.constant 9.99999974E-6 : f32
    %130 = vector.broadcast %cst_45 : f32 to vector<32x1xf32>
    %131 = arith.addf %129, %130 : vector<32x1xf32>
    %132 = math.rsqrt %131 : vector<32x1xf32>
    %133 = arith.mulf %12, %132 : vector<32x1xf32>
    %134 = arith.mulf %126, %133 : vector<32x1xf32>
    %135 = arith.subf %13, %134 : vector<32x1xf32>
    %136 = vector.broadcast %133 : vector<32x1xf32> to vector<32x256xf32>
    %137 = arith.mulf %118, %136 : vector<32x256xf32>
    %138 = vector.broadcast %135 : vector<32x1xf32> to vector<32x256xf32>
    %139 = arith.addf %137, %138 : vector<32x256xf32>
    %cst_46 = arith.constant 0.000000e+00 : f32
    %140 = vector.broadcast %cst_46 : f32 to vector<32x256xf32>
    %141 = arith.maximumf %139, %140 : vector<32x256xf32>
    %142 = arith.addf %18, %141 : vector<32x256xf32>
    %cst_47 = arith.constant 0.000000e+00 : f32
    %143 = vector.broadcast %cst_47 : f32 to vector<32x256xf32>
    %144 = arith.maximumf %142, %143 : vector<32x256xf32>
    %c0_48 = arith.constant 0 : index
    %c0_49 = arith.constant 0 : index
    %c0_50 = arith.constant 0 : index
    %145 = vector.load %arg10[%c0_48, %c0_49, %c0_50] : memref<2x32x256xf32, #tpu.memory_space<vmem>>, vector<1x32x256xf32>
    %146 = vector.shape_cast %145 : vector<1x32x256xf32> to vector<32x256xf32>
    %147 = vector.shape_cast %144 : vector<32x256xf32> to vector<1x32x256xf32>
    tpu.vector_store %arg10[%c0_48, %c0_49, %c0_50], %147 {strides = array<i32>} : memref<2x32x256xf32, #tpu.memory_space<vmem>>, vector<1x32x256xf32>,
    %c1 = arith.constant 1 : index
    %c0_51 = arith.constant 0 : index
    %c0_52 = arith.constant 0 : index
    %148 = vector.load %arg1[%c1, %c0_51, %c0_52] : memref<2x32x256xf32, #tpu.memory_space<vmem>>, vector<1x32x256xf32>
    %149 = vector.shape_cast %148 : vector<1x32x256xf32> to vector<32x256xf32>
    %150 = arith.truncf %149 : vector<32x256xf32> to vector<32x256xbf16>
    %cst_53 = arith.constant dense<0.000000e+00> : vector<8x256xf32>
    %151 = tpu.matmul %0, %150, %cst_53 {dimension_numbers = #tpu.dot_dimension_numbers<[1], [0], [0], [1], [0, 0, 1, 1], [], []>} : vector<8x32xbf16>, vector<32x256xbf16>, vector<8x256xf32> -> vector<8x256xf32>
    %152 = vector.broadcast %5 : vector<8x1xf32> to vector<8x256xf32>
    %153 = arith.addf %151, %152 : vector<8x256xf32>
    %cst_54 = arith.constant dense<0.000000e+00> : vector<8xf32>
    %154 = vector.multi_reduction <add>, %153, %cst_54 [1] : vector<8x256xf32> to vector<8xf32>
    %155 = vector.shape_cast %154 : vector<8xf32> to vector<8x1xf32>
    %156 = arith.mulf %153, %153 : vector<8x256xf32>
    %cst_55 = arith.constant dense<0.000000e+00> : vector<8xf32>
    %157 = vector.multi_reduction <add>, %156, %cst_55 [1] : vector<8x256xf32> to vector<8xf32>
    %158 = vector.shape_cast %157 : vector<8xf32> to vector<8x1xf32>
    %159 = tpu.concatenate %155, %158 in 1 : vector<8x1xf32>, vector<8x1xf32> -> vector<8x2xf32>
    %cst_56 = arith.constant dense<0.000000e+00> : vector<8x2xf32>
    %160 = tpu.matmul %14, %159, %cst_56 {dimension_numbers = #tpu.dot_dimension_numbers<[1], [0], [0], [1], [0, 0, 1, 1], [], []>} : vector<8x8xf32>, vector<8x2xf32>, vector<8x2xf32> -> vector<8x2xf32>
    %161 = vector.extract_strided_slice %160 {offsets = [0, 0], sizes = [8, 1], strides = [1, 1]} : vector<8x2xf32> to vector<8x1xf32>
    %162 = vector.extract_strided_slice %160 {offsets = [0, 1], sizes = [8, 1], strides = [1, 1]} : vector<8x2xf32> to vector<8x1xf32>
    %163 = arith.mulf %161, %161 : vector<8x1xf32>
    %164 = arith.subf %162, %163 : vector<8x1xf32>
    %cst_57 = arith.constant 9.99999974E-6 : f32
    %165 = vector.broadcast %cst_57 : f32 to vector<8x1xf32>
    %166 = arith.addf %164, %165 : vector<8x1xf32>
    %167 = math.rsqrt %166 : vector<8x1xf32>
    %168 = arith.mulf %6, %167 : vector<8x1xf32>
    %169 = arith.mulf %161, %168 : vector<8x1xf32>
    %170 = arith.subf %7, %169 : vector<8x1xf32>
    %171 = vector.broadcast %168 : vector<8x1xf32> to vector<8x256xf32>
    %172 = arith.mulf %153, %171 : vector<8x256xf32>
    %173 = vector.broadcast %170 : vector<8x1xf32> to vector<8x256xf32>
    %174 = arith.addf %172, %173 : vector<8x256xf32>
    %cst_58 = arith.constant 0.000000e+00 : f32
    %175 = vector.broadcast %cst_58 : f32 to vector<8x256xf32>
    %176 = arith.maximumf %174, %175 : vector<8x256xf32>
    %c17_i32_59 = arith.constant 17 : i32
    %177 = tpu.dynamic_rotate %176 by %c17_i32_59 dim 1 : vector<8x256xf32>, i32 -> vector<8x256xf32>
    %178 = vector.extract_strided_slice %16 {offsets = [0, 0], sizes = [1, 256], strides = [1, 1]} : vector<9x256xf32> to vector<1x256xf32>
    %179 = vector.broadcast %178 : vector<1x256xf32> to vector<8x256xf32>
    %180 = arith.mulf %177, %179 : vector<8x256xf32>
    %c0_60 = arith.constant 0 : index
    %c0_61 = arith.constant 0 : index
    %181 = vector.load %arg11[%c0_60, %c0_61] : memref<72x256xf32, #tpu.memory_space<vmem>>, vector<8x256xf32>
    tpu.vector_store %arg11[%c0_60, %c0_61], %180 {strides = array<i32>} : memref<72x256xf32, #tpu.memory_space<vmem>>, vector<8x256xf32>,
    %c16_i32_62 = arith.constant 16 : i32
    %182 = tpu.dynamic_rotate %176 by %c16_i32_62 dim 1 : vector<8x256xf32>, i32 -> vector<8x256xf32>
    %183 = vector.extract_strided_slice %16 {offsets = [1, 0], sizes = [1, 256], strides = [1, 1]} : vector<9x256xf32> to vector<1x256xf32>
    %184 = vector.broadcast %183 : vector<1x256xf32> to vector<8x256xf32>
    %185 = arith.mulf %182, %184 : vector<8x256xf32>
    %c8_63 = arith.constant 8 : index
    %c0_64 = arith.constant 0 : index
    %186 = vector.load %arg11[%c8_63, %c0_64] : memref<72x256xf32, #tpu.memory_space<vmem>>, vector<8x256xf32>
    tpu.vector_store %arg11[%c8_63, %c0_64], %185 {strides = array<i32>} : memref<72x256xf32, #tpu.memory_space<vmem>>, vector<8x256xf32>,
    %c15_i32_65 = arith.constant 15 : i32
    %187 = tpu.dynamic_rotate %176 by %c15_i32_65 dim 1 : vector<8x256xf32>, i32 -> vector<8x256xf32>
    %188 = vector.extract_strided_slice %16 {offsets = [2, 0], sizes = [1, 256], strides = [1, 1]} : vector<9x256xf32> to vector<1x256xf32>
    %189 = vector.broadcast %188 : vector<1x256xf32> to vector<8x256xf32>
    %190 = arith.mulf %187, %189 : vector<8x256xf32>
    %c16_66 = arith.constant 16 : index
    %c0_67 = arith.constant 0 : index
    %191 = vector.load %arg11[%c16_66, %c0_67] : memref<72x256xf32, #tpu.memory_space<vmem>>, vector<8x256xf32>
    tpu.vector_store %arg11[%c16_66, %c0_67], %190 {strides = array<i32>} : memref<72x256xf32, #tpu.memory_space<vmem>>, vector<8x256xf32>,
    %c1_i32_68 = arith.constant 1 : i32
    %192 = tpu.dynamic_rotate %176 by %c1_i32_68 dim 1 : vector<8x256xf32>, i32 -> vector<8x256xf32>
    %193 = vector.extract_strided_slice %16 {offsets = [3, 0], sizes = [1, 256], strides = [1, 1]} : vector<9x256xf32> to vector<1x256xf32>
    %194 = vector.broadcast %193 : vector<1x256xf32> to vector<8x256xf32>
    %195 = arith.mulf %192, %194 : vector<8x256xf32>
    %c24_69 = arith.constant 24 : index
    %c0_70 = arith.constant 0 : index
    %196 = vector.load %arg11[%c24_69, %c0_70] : memref<72x256xf32, #tpu.memory_space<vmem>>, vector<8x256xf32>
    tpu.vector_store %arg11[%c24_69, %c0_70], %195 {strides = array<i32>} : memref<72x256xf32, #tpu.memory_space<vmem>>, vector<8x256xf32>,
    %c32_71 = arith.constant 32 : index
    %c0_72 = arith.constant 0 : index
    %197 = vector.load %arg11[%c32_71, %c0_72] : memref<72x256xf32, #tpu.memory_space<vmem>>, vector<8x256xf32>
    tpu.vector_store %arg11[%c32_71, %c0_72], %176 {strides = array<i32>} : memref<72x256xf32, #tpu.memory_space<vmem>>, vector<8x256xf32>,
    %c255_i32_73 = arith.constant 255 : i32
    %198 = tpu.dynamic_rotate %176 by %c255_i32_73 dim 1 : vector<8x256xf32>, i32 -> vector<8x256xf32>
    %199 = vector.extract_strided_slice %16 {offsets = [5, 0], sizes = [1, 256], strides = [1, 1]} : vector<9x256xf32> to vector<1x256xf32>
    %200 = vector.broadcast %199 : vector<1x256xf32> to vector<8x256xf32>
    %201 = arith.mulf %198, %200 : vector<8x256xf32>
    %c40_74 = arith.constant 40 : index
    %c0_75 = arith.constant 0 : index
    %202 = vector.load %arg11[%c40_74, %c0_75] : memref<72x256xf32, #tpu.memory_space<vmem>>, vector<8x256xf32>
    tpu.vector_store %arg11[%c40_74, %c0_75], %201 {strides = array<i32>} : memref<72x256xf32, #tpu.memory_space<vmem>>, vector<8x256xf32>,
    %c241_i32_76 = arith.constant 241 : i32
    %203 = tpu.dynamic_rotate %176 by %c241_i32_76 dim 1 : vector<8x256xf32>, i32 -> vector<8x256xf32>
    %204 = vector.extract_strided_slice %16 {offsets = [6, 0], sizes = [1, 256], strides = [1, 1]} : vector<9x256xf32> to vector<1x256xf32>
    %205 = vector.broadcast %204 : vector<1x256xf32> to vector<8x256xf32>
    %206 = arith.mulf %203, %205 : vector<8x256xf32>
    %c48_77 = arith.constant 48 : index
    %c0_78 = arith.constant 0 : index
    %207 = vector.load %arg11[%c48_77, %c0_78] : memref<72x256xf32, #tpu.memory_space<vmem>>, vector<8x256xf32>
    tpu.vector_store %arg11[%c48_77, %c0_78], %206 {strides = array<i32>} : memref<72x256xf32, #tpu.memory_space<vmem>>, vector<8x256xf32>,
    %c240_i32_79 = arith.constant 240 : i32
    %208 = tpu.dynamic_rotate %176 by %c240_i32_79 dim 1 : vector<8x256xf32>, i32 -> vector<8x256xf32>
    %209 = vector.extract_strided_slice %16 {offsets = [7, 0], sizes = [1, 256], strides = [1, 1]} : vector<9x256xf32> to vector<1x256xf32>
    %210 = vector.broadcast %209 : vector<1x256xf32> to vector<8x256xf32>
    %211 = arith.mulf %208, %210 : vector<8x256xf32>
    %c56_80 = arith.constant 56 : index
    %c0_81 = arith.constant 0 : index
    %212 = vector.load %arg11[%c56_80, %c0_81] : memref<72x256xf32, #tpu.memory_space<vmem>>, vector<8x256xf32>
    tpu.vector_store %arg11[%c56_80, %c0_81], %211 {strides = array<i32>} : memref<72x256xf32, #tpu.memory_space<vmem>>, vector<8x256xf32>,
    %c239_i32_82 = arith.constant 239 : i32
    %213 = tpu.dynamic_rotate %176 by %c239_i32_82 dim 1 : vector<8x256xf32>, i32 -> vector<8x256xf32>
    %214 = vector.extract_strided_slice %16 {offsets = [8, 0], sizes = [1, 256], strides = [1, 1]} : vector<9x256xf32> to vector<1x256xf32>
    %215 = vector.broadcast %214 : vector<1x256xf32> to vector<8x256xf32>
    %216 = arith.mulf %213, %215 : vector<8x256xf32>
    %c64_83 = arith.constant 64 : index
    %c0_84 = arith.constant 0 : index
    %217 = vector.load %arg11[%c64_83, %c0_84] : memref<72x256xf32, #tpu.memory_space<vmem>>, vector<8x256xf32>
    tpu.vector_store %arg11[%c64_83, %c0_84], %216 {strides = array<i32>} : memref<72x256xf32, #tpu.memory_space<vmem>>, vector<8x256xf32>,
    %c0_85 = arith.constant 0 : index
    %c0_86 = arith.constant 0 : index
    %218 = vector.load %arg11[%c0_85, %c0_86] : memref<72x256xf32, #tpu.memory_space<vmem>>, vector<72x256xf32>
    %219 = arith.truncf %218 : vector<72x256xf32> to vector<72x256xbf16>
    %cst_87 = arith.constant dense<0.000000e+00> : vector<8x256xf32>
    %220 = tpu.matmul %1, %219, %cst_87 {dimension_numbers = #tpu.dot_dimension_numbers<[1], [0], [0], [1], [0, 0, 1, 1], [], []>} : vector<8x72xbf16>, vector<72x256xbf16>, vector<8x256xf32> -> vector<8x256xf32>
    %221 = vector.broadcast %8 : vector<8x1xf32> to vector<8x256xf32>
    %222 = arith.addf %220, %221 : vector<8x256xf32>
    %cst_88 = arith.constant dense<0.000000e+00> : vector<8xf32>
    %223 = vector.multi_reduction <add>, %222, %cst_88 [1] : vector<8x256xf32> to vector<8xf32>
    %224 = vector.shape_cast %223 : vector<8xf32> to vector<8x1xf32>
    %225 = arith.mulf %222, %222 : vector<8x256xf32>
    %cst_89 = arith.constant dense<0.000000e+00> : vector<8xf32>
    %226 = vector.multi_reduction <add>, %225, %cst_89 [1] : vector<8x256xf32> to vector<8xf32>
    %227 = vector.shape_cast %226 : vector<8xf32> to vector<8x1xf32>
    %228 = tpu.concatenate %224, %227 in 1 : vector<8x1xf32>, vector<8x1xf32> -> vector<8x2xf32>
    %cst_90 = arith.constant dense<0.000000e+00> : vector<8x2xf32>
    %229 = tpu.matmul %14, %228, %cst_90 {dimension_numbers = #tpu.dot_dimension_numbers<[1], [0], [0], [1], [0, 0, 1, 1], [], []>} : vector<8x8xf32>, vector<8x2xf32>, vector<8x2xf32> -> vector<8x2xf32>
    %230 = vector.extract_strided_slice %229 {offsets = [0, 0], sizes = [8, 1], strides = [1, 1]} : vector<8x2xf32> to vector<8x1xf32>
    %231 = vector.extract_strided_slice %229 {offsets = [0, 1], sizes = [8, 1], strides = [1, 1]} : vector<8x2xf32> to vector<8x1xf32>
    %232 = arith.mulf %230, %230 : vector<8x1xf32>
    %233 = arith.subf %231, %232 : vector<8x1xf32>
    %cst_91 = arith.constant 9.99999974E-6 : f32
    %234 = vector.broadcast %cst_91 : f32 to vector<8x1xf32>
    %235 = arith.addf %233, %234 : vector<8x1xf32>
    %236 = math.rsqrt %235 : vector<8x1xf32>
    %237 = arith.mulf %9, %236 : vector<8x1xf32>
    %238 = arith.mulf %230, %237 : vector<8x1xf32>
    %239 = arith.subf %10, %238 : vector<8x1xf32>
    %240 = vector.broadcast %237 : vector<8x1xf32> to vector<8x256xf32>
    %241 = arith.mulf %222, %240 : vector<8x256xf32>
    %242 = vector.broadcast %239 : vector<8x1xf32> to vector<8x256xf32>
    %243 = arith.addf %241, %242 : vector<8x256xf32>
    %cst_92 = arith.constant 0.000000e+00 : f32
    %244 = vector.broadcast %cst_92 : f32 to vector<8x256xf32>
    %245 = arith.maximumf %243, %244 : vector<8x256xf32>
    %246 = arith.truncf %245 : vector<8x256xf32> to vector<8x256xbf16>
    %cst_93 = arith.constant dense<0.000000e+00> : vector<32x256xf32>
    %247 = tpu.matmul %2, %246, %cst_93 {dimension_numbers = #tpu.dot_dimension_numbers<[1], [0], [0], [1], [0, 0, 1, 1], [], []>} : vector<32x8xbf16>, vector<8x256xbf16>, vector<32x256xf32> -> vector<32x256xf32>
    %248 = vector.broadcast %11 : vector<32x1xf32> to vector<32x256xf32>
    %249 = arith.addf %247, %248 : vector<32x256xf32>
    %cst_94 = arith.constant dense<0.000000e+00> : vector<32xf32>
    %250 = vector.multi_reduction <add>, %249, %cst_94 [1] : vector<32x256xf32> to vector<32xf32>
    %251 = vector.shape_cast %250 : vector<32xf32> to vector<32x1xf32>
    %252 = arith.mulf %249, %249 : vector<32x256xf32>
    %cst_95 = arith.constant dense<0.000000e+00> : vector<32xf32>
    %253 = vector.multi_reduction <add>, %252, %cst_95 [1] : vector<32x256xf32> to vector<32xf32>
    %254 = vector.shape_cast %253 : vector<32xf32> to vector<32x1xf32>
    %255 = tpu.concatenate %251, %254 in 1 : vector<32x1xf32>, vector<32x1xf32> -> vector<32x2xf32>
    %cst_96 = arith.constant dense<0.000000e+00> : vector<32x2xf32>
    %256 = tpu.matmul %15, %255, %cst_96 {dimension_numbers = #tpu.dot_dimension_numbers<[1], [0], [0], [1], [0, 0, 1, 1], [], []>} : vector<32x32xf32>, vector<32x2xf32>, vector<32x2xf32> -> vector<32x2xf32>
    %257 = vector.extract_strided_slice %256 {offsets = [0, 0], sizes = [32, 1], strides = [1, 1]} : vector<32x2xf32> to vector<32x1xf32>
    %258 = vector.extract_strided_slice %256 {offsets = [0, 1], sizes = [32, 1], strides = [1, 1]} : vector<32x2xf32> to vector<32x1xf32>
    %259 = arith.mulf %257, %257 : vector<32x1xf32>
    %260 = arith.subf %258, %259 : vector<32x1xf32>
    %cst_97 = arith.constant 9.99999974E-6 : f32
    %261 = vector.broadcast %cst_97 : f32 to vector<32x1xf32>
    %262 = arith.addf %260, %261 : vector<32x1xf32>
    %263 = math.rsqrt %262 : vector<32x1xf32>
    %264 = arith.mulf %12, %263 : vector<32x1xf32>
    %265 = arith.mulf %257, %264 : vector<32x1xf32>
    %266 = arith.subf %13, %265 : vector<32x1xf32>
    %267 = vector.broadcast %264 : vector<32x1xf32> to vector<32x256xf32>
    %268 = arith.mulf %249, %267 : vector<32x256xf32>
    %269 = vector.broadcast %266 : vector<32x1xf32> to vector<32x256xf32>
    %270 = arith.addf %268, %269 : vector<32x256xf32>
    %cst_98 = arith.constant 0.000000e+00 : f32
    %271 = vector.broadcast %cst_98 : f32 to vector<32x256xf32>
    %272 = arith.maximumf %270, %271 : vector<32x256xf32>
    %273 = arith.addf %149, %272 : vector<32x256xf32>
    %cst_99 = arith.constant 0.000000e+00 : f32
    %274 = vector.broadcast %cst_99 : f32 to vector<32x256xf32>
    %275 = arith.maximumf %273, %274 : vector<32x256xf32>
    %c1_100 = arith.constant 1 : index
    %c0_101 = arith.constant 0 : index
    %c0_102 = arith.constant 0 : index
    %276 = vector.load %arg10[%c1_100, %c0_101, %c0_102] : memref<2x32x256xf32, #tpu.memory_space<vmem>>, vector<1x32x256xf32>
    %277 = vector.shape_cast %276 : vector<1x32x256xf32> to vector<32x256xf32>
    %278 = vector.shape_cast %275 : vector<32x256xf32> to vector<1x32x256xf32>
    tpu.vector_store %arg10[%c1_100, %c0_101, %c0_102], %278 {strides = array<i32>} : memref<2x32x256xf32, #tpu.memory_space<vmem>>, vector<1x32x256xf32>,
    return
  }
  func.func @transform_0(%arg0: i32) -> (i32, i32, i32) {
    %c0_i32 = arith.constant 0 : i32
    %c0_i32_0 = arith.constant 0 : i32
    %c0_i32_1 = arith.constant 0 : i32
    return %arg0, %c0_i32, %c0_i32_0 : i32, i32, i32
  }
  func.func @transform_1(%arg0: i32) -> (i32, i32) {
    %c0_i32 = arith.constant 0 : i32
    %c0_i32_0 = arith.constant 0 : i32
    %c0_i32_1 = arith.constant 0 : i32
    return %c0_i32, %c0_i32_0 : i32, i32
  }
  func.func @transform_2(%arg0: i32) -> (i32, i32) {
    %c0_i32 = arith.constant 0 : i32
    %c0_i32_0 = arith.constant 0 : i32
    %c0_i32_1 = arith.constant 0 : i32
    return %c0_i32, %c0_i32_0 : i32, i32
  }
  func.func @transform_3(%arg0: i32) -> (i32, i32) {
    %c0_i32 = arith.constant 0 : i32
    %c0_i32_0 = arith.constant 0 : i32
    %c0_i32_1 = arith.constant 0 : i32
    return %c0_i32, %c0_i32_0 : i32, i32
  }
  func.func @transform_4(%arg0: i32) -> (i32, i32) {
    %c0_i32 = arith.constant 0 : i32
    %c0_i32_0 = arith.constant 0 : i32
    %c0_i32_1 = arith.constant 0 : i32
    return %c0_i32, %c0_i32_0 : i32, i32
  }
  func.func @transform_5(%arg0: i32) -> (i32, i32) {
    %c0_i32 = arith.constant 0 : i32
    %c0_i32_0 = arith.constant 0 : i32
    %c0_i32_1 = arith.constant 0 : i32
    return %c0_i32, %c0_i32_0 : i32, i32
  }
  func.func @transform_6(%arg0: i32) -> (i32, i32) {
    %c0_i32 = arith.constant 0 : i32
    %c0_i32_0 = arith.constant 0 : i32
    %c0_i32_1 = arith.constant 0 : i32
    return %c0_i32, %c0_i32_0 : i32, i32
  }
  func.func @transform_7(%arg0: i32) -> (i32, i32) {
    %c0_i32 = arith.constant 0 : i32
    %c0_i32_0 = arith.constant 0 : i32
    %c0_i32_1 = arith.constant 0 : i32
    return %c0_i32, %c0_i32_0 : i32, i32
  }
  func.func @transform_8(%arg0: i32) -> (i32, i32) {
    %c0_i32 = arith.constant 0 : i32
    %c0_i32_0 = arith.constant 0 : i32
    %c0_i32_1 = arith.constant 0 : i32
    return %c0_i32, %c0_i32_0 : i32, i32
  }
  func.func @transform_9(%arg0: i32) -> (i32, i32, i32) {
    %c0_i32 = arith.constant 0 : i32
    %c0_i32_0 = arith.constant 0 : i32
    %c0_i32_1 = arith.constant 0 : i32
    return %arg0, %c0_i32, %c0_i32_0 : i32, i32, i32
  }
}

</mosaic_0001>

<bundles_post_ra>
// kernel: tpu_custom_call.1
= control target key start
LH: loop header
LB: loop body
LE: loop exit
PB: predicated region body
PF: predicated region fallthrough
CT: control target
= control target key end

     0   :  { %14 = vsyncpa [#allocation4], 0  ;;  %s2965_s0 = inlined_call_operand.hbm [shape: f32[2,32,256], index: 0, kind: input, shape index: {}]   ;;  %s2966_s1 = inlined_call_operand.hbm [shape: bf16[8,32], index: 1, kind: input, shape index: {}]   ;;  %s2967_s2 = inlined_call_operand.hbm [shape: bf16[8,72], index: 2, kind: input, shape index: {}]   ;;  %s2968_s3 = inlined_call_operand.vmem [shape: bf16[32,8], index: 3, kind: input, shape index: {}]   ;;  %s2969_s4 = inlined_call_operand.hbm [shape: f32[8,6], index: 4, kind: input, shape index: {}]   ;;  %s2970_s5 = inlined_call_operand.vmem [shape: f32[32,3], index: 5, kind: input, shape index: {}]   ;;  %s2971_s6 = inlined_call_operand.vmem [shape: f32[8,8], index: 6, kind: input, shape index: {}]   ;;  %s2972_s7 = inlined_call_operand.vmem [shape: f32[32,32], index: 7, kind: input, shape index: {}]   ;;  %s2973_s8 = inlined_call_operand.vmem [shape: f32[9,256], index: 8, kind: input, shape index: {}]   ;;  %s2974_s9 = inlined_call_operand.hbm [shape: f32[2,32,256], index: 9, kind: output, shape index: {}]  }
   0x1   :  { %15 = vsyncpa [#allocation7], 0 }
   0x2   :  { %16 = vsyncpa [#allocation10], 0 }
   0x3   :  { %17 = vsyncpa [#allocation5], 0  ;;  %s2152_s30 = smov [#allocation6]   ;;  %s2153_s11 = smov [#allocation3]  }
   0x4   :  { %s36_s10 = sshll.u32 %s2152_s30, 4  ;;  %s23_s12 = sshll.u32 %s2153_s11, 4  ;;  %s37_s10 = int_to_ptr.vmem [resolvable:$true] %s36_s10  ;;  %s2228_s12 = int_to_ptr.vmem [resolvable:$true] %s23_s12 }
   0x5   :  { %s2034_s15 = scalar_lea.hbm %s2966_s1, 64 }
   0x6   :  { %p2035_p0 = scmp.ne.s32.totalorder %s2966_s1, %s2034_s15  ;;  %p2038_p1 = scmp.lt.u32.totalorder %s2034_s15, %s2966_s1 }
   0x8   :  { %p2040_p2 = pnand %p2038_p1, %p2035_p0 }
   0xa   :  { %2043 = shalt.err (!%p2040_p2)
}
   0xb   :  { %s2044_s20 = scalar_lea.vmem %s37_s10, 64  ;;  %p2049_p4 = scmp.lt.s32.totalorder %s37_s10, %s37_s10 }
   0xc   :  { %p2045_p3 = scmp.ne.s32.totalorder %s37_s10, %s2044_s20  ;;  %p2050_p5 = scmp.lt.s32.totalorder %s2044_s20, %s2044_s20 }
   0xe   :  { %p2051_p6 = por %p2050_p5, %p2049_p4 }
  0x10   :  { %p2052_p7 = pnand %p2051_p6, %p2045_p3 }
  0x12   :  { %2055 = shalt.err (!%p2052_p7)
}
  0x13   :  { %39 = dma.hbm_to_vmem [thread:$0]  %s2966_s1, 64, %s37_s10, [#allocation7]  }
  0x14   :  { %s2056_s25 = scalar_lea.hbm %s2965_s0, 2048 }
  0x15   :  { %p2057_p8 = scmp.ne.s32.totalorder %s2965_s0, %s2056_s25  ;;  %p2060_p9 = scmp.lt.u32.totalorder %s2056_s25, %s2965_s0 }
  0x17   :  { %p2062_p10 = pnand %p2060_p9, %p2057_p8 }
  0x19   :  { %2065 = shalt.err (!%p2062_p10)
}
  0x1a   :  { %s2066_s30 = scalar_lea.vmem %s2228_s12, 2048  ;;  %p2071_p12 = scmp.lt.s32.totalorder %s2228_s12, %s2228_s12 }
  0x1b   :  { %p2067_p11 = scmp.ne.s32.totalorder %s2228_s12, %s2066_s30  ;;  %p2072_p13 = scmp.lt.s32.totalorder %s2066_s30, %s2066_s30 }
  0x1d   :  { %p2073_p0 = por %p2072_p13, %p2071_p12 }
  0x1f   :  { %p2074_p1 = pnand %p2073_p0, %p2067_p11 }
  0x21   :  { %2077 = shalt.err (!%p2074_p1)
}
  0x22   :  { %s2154_s1 = smov 256   ;;  %s2155_s10 = smov 16  }
  0x23   :  { %29 = dma.hbm_to_vmem [thread:$0]  %s2965_s0, 2048, %s2228_s12, [#allocation4], %s2154_s1, %s2154_s1, %s2155_s10  }
  0x24   :  { %s2156_s14 = smov [#allocation8]   ;;  %s2157_s16 = smov [#allocation9]  }
  0x25   :  { %s46_s15 = sshll.u32 %s2156_s14, 4  ;;  %s58_s17 = sshll.u32 %s2157_s16, 4  ;;  %s47_s15 = int_to_ptr.vmem [resolvable:$true] %s46_s15  ;;  %s59_s17 = int_to_ptr.vmem [resolvable:$true] %s58_s17 }
  0x26   :  { %s2078_s20 = scalar_lea.hbm %s2967_s2, 64 }
  0x27   :  { %p2079_p2 = scmp.ne.s32.totalorder %s2967_s2, %s2078_s20  ;;  %p2082_p3 = scmp.lt.u32.totalorder %s2078_s20, %s2967_s2 }
  0x29   :  { %p2084_p4 = pnand %p2082_p3, %p2079_p2 }
  0x2b   :  { %2087 = shalt.err (!%p2084_p4)
}
  0x2c   :  { %s2088_s0 = scalar_lea.vmem %s47_s15, 64  ;;  %p2093_p6 = scmp.lt.s32.totalorder %s47_s15, %s47_s15 }
  0x2d   :  { %p2089_p5 = scmp.ne.s32.totalorder %s47_s15, %s2088_s0  ;;  %p2094_p7 = scmp.lt.s32.totalorder %s2088_s0, %s2088_s0 }
  0x2f   :  { %p2095_p8 = por %p2094_p7, %p2093_p6 }
  0x31   :  { %p2096_p9 = pnand %p2095_p8, %p2089_p5 }
  0x33   :  { %2099 = shalt.err (!%p2096_p9)
}
  0x34   :  { %49 = dma.hbm_to_vmem [thread:$0]  %s2967_s2, 64, %s47_s15, [#allocation7]  }
  0x35   :  { %s2100_s28 = scalar_lea.hbm %s2969_s4, 128 }
  0x36   :  { %p2101_p10 = scmp.ne.s32.totalorder %s2969_s4, %s2100_s28  ;;  %p2104_p11 = scmp.lt.u32.totalorder %s2100_s28, %s2969_s4 }
  0x38   :  { %p2106_p12 = pnand %p2104_p11, %p2101_p10 }
  0x3a   :  { %2109 = shalt.err (!%p2106_p12)
}
  0x3b   :  { %s2110_s14 = scalar_lea.vmem %s59_s17, 128  ;;  %p2115_p0 = scmp.lt.s32.totalorder %s59_s17, %s59_s17 }
  0x3c   :  { %p2111_p13 = scmp.ne.s32.totalorder %s59_s17, %s2110_s14  ;;  %p2116_p1 = scmp.lt.s32.totalorder %s2110_s14, %s2110_s14 }
  0x3e   :  { %p2117_p2 = por %p2116_p1, %p2115_p0 }
  0x40   :  { %p2118_p3 = pnand %p2117_p2, %p2111_p13 }
  0x42   :  { %2121 = shalt.err (!%p2118_p3)
}
  0x43   :  { %61 = dma.hbm_to_vmem [thread:$0]  %s2969_s4, 128, %s59_s17, [#allocation10]  }
  0x44   :  { %2144 = dma.done.wait [#allocation4], 2048  }
  0x45   :  { %2145 = vsyncadd [#allocation4], 4294965248 }
  0x46   :  { %2146 = dma.done.wait [#allocation7], 128  }
  0x47   :  { %2147 = vsyncadd [#allocation7], 4294967168 }
  0x48   :  { %2148 = dma.done.wait [#allocation10], 128  }
  0x49   :  { %2149 = vsyncadd [#allocation10], 4294967168  ;;  %v2979_v0 = vmov 0   ;;  %v104_v1 = vld [vmem:[#allocation3 + $0x8] sm:$0xff]  ;;  %v106_v2 = vld [vmem:[#allocation3 + $0x18] sm:$0xff]  ;;  %vm120_vm0 = vcmask 261120   ;;  %v287_v54 = vlaneseq }
  0x4a   :  { %156 = vmatprep.mubr.bf16.mxu0 %v2979_v0  ;;  %1975 = vset.pattern.permute.xlu0 %v2979_v0  ;;  %v103_v3 = vld [vmem:[#allocation3] sm:$0xff]  ;;  %v112_v4 = vpack.c.bf16 %v106_v2, %v104_v1  ;;  %v105_v5 = vld [vmem:[#allocation3 + $0x10] sm:$0xff]  ;;  %v108_v6 = vld [vmem:[#allocation3 + $0x28] sm:$0xff]  ;;  %v2159_v26 = vmov 0.0   ;;  %vm2160_vm1 = vmmov 0   ;;  %vm173_vm2 = vcmask 7168  }
  0x4b   :  { %514 = vmatprep.mubr.bf16.mxu1 %v2979_v0  ;;  %v110_v7 = vld [vmem:[#allocation3 + $0x38] sm:$0xff]  ;;  %v111_v8 = vpack.c.bf16 %v105_v5, %v103_v3  ;;  %v107_v10 = vld [vmem:[#allocation3 + $0x20] sm:$0xff]  ;;  %v109_v11 = vld [vmem:[#allocation3 + $0x30] sm:$0xff]  ;;  %vm175_vm3 = vcmask 64512   ;;  %s2161_s17 = smov 1   ;;  %v2977_v37 = vmov 1  }
  0x4c   :  { %v114_v9 = vpack.c.bf16 %v110_v7, %v108_v6  ;;  %124 = vmatprep.subr.bf16.mxu0 %v112_v4  ;;  %v2289_v12 = vld [vmem:[#allocation9] sm:$0xff]  ;;  %v113_v13 = vpack.c.bf16 %v109_v11, %v107_v10  ;;  %v2292_v14 = vld [vmem:[#allocation6] sm:$0xf]  ;;  %1976 = vset.pattern.permute.xlu1 %v2977_v37  ;;  %s2164_s18 = smov 2   ;;  %v2975_v42 = vmov 2   ;;  %s2166_s19 = smov 17  }
  0x4d   :  { %125 = vmatpush1.bf16.msra.mxu0 %v111_v8  ;;  %117 = vperm.xlu0 %1975, %v2289_v12   ;;  %v2306_v29 = vld [vmem:[%s2971_s6] sm:$0xff]  ;;  %s2163_s6 = smov 127   ;;  %s2167_s20 = smov 15   ;;  %v2171_v53 = vmov 3   ;;  %v2358_v55 = vshrl.u32 %v287_v54, 7  ;;  %v2360_v57 = vand.u32 127, %v287_v54 }
  0x4e   :  { %126 = vmatprep.subr.bf16.mxu0 %v114_v9  ;;  %s2168_s21 = smov 113   ;;  %s2169_s22 = smov 112   ;;  %v2366_v59 = vld [vmem:[%s2973_s8 + $0x8] sm:$0xff]  ;;  %v2372_v61 = vld [vmem:[%s2973_s8] sm:$0xff]  ;;  %vm475_vm12 = vcmask 1043456   ;;  %vm471_vm13 = vcmask 588800  }
  0x4f   :  { %s2170_s23 = smov 111   ;;  %v294_v58 = vsub.s32 0, %v2358_v55  ;;  %v313_v60 = vsub.s32 1, %v2358_v55  ;;  %vm289_vm4 = vcmp.lt.s32.totalorder %v2360_v57, 17  ;;  %vm308_vm5 = vcmp.lt.s32.totalorder %v2360_v57, 16  ;;  %s2174_s30 = smov 124  }
  0x50   :  { %vm327_vm6 = vcmp.lt.s32.totalorder %v2360_v57, 15  ;;  %vm346_vm7 = vcmp.lt.s32.totalorder %v2360_v57, 1  ;;  %vm367_vm8 = vcmp.lt.s32.totalorder %v2360_v57, 127  ;;  %vm386_vm9 = vcmp.lt.s32.totalorder %v2360_v57, 113  ;;  %s2176_s11 = smov 5  }
  0x51   :  { %127 = vmatpush1.bf16.msra.mxu0 %v113_v13  ;;  %1978 = vset.pattern.permute.xlu0 %v2171_v53  ;;  %v2376_v1 = vrot.slane %v2366_v59, %v294_v58  ;;  %v2380_v2 = vrot.slane %v2366_v59, %v313_v60  ;;  %v2383_v3 = vrot.slane %v2372_v61, %v294_v58  ;;  %v391_v53 = vsub.s32 6, %v2358_v55 }
  0x52   :  { %1885 = vmatprep.subr.mxu0 %v2159_v26  ;;  %v2386_v4 = vrot.slane %v2372_v61, %v313_v60  ;;  %v410_v58 = vsub.s32 7, %v2358_v55  ;;  %vm405_vm10 = vcmp.lt.s32.totalorder %v2360_v57, 112  ;;  %vm424_vm11 = vcmp.lt.s32.totalorder %v2360_v57, 111 }
  0x54   :  { %1833 = vmatmul.mubr.msk.bf16.vlgmr.msra.gmra.mrb[0].mxu0 %vm120_vm0, %v2292_v14 }
  0x55   :  { %1887 = vmatprep.mubr.msk.f32.mxu0 %vm2160_vm1, %v2159_v26 }
  0xcc   :  { %v2296_v15 = vpop.permute.xlu0 %117 }
 0x127   :  { %v158_v16 = vpop.f32.mrb[0].mxu0 }
 0x128   :  { %v159_v17 = vadd.f32 %v158_v16, %v2296_v15  ;;  %v160_v18 = vpop.f32.mrb[1].mxu0 }
 0x129   :  { %v161_v19 = vadd.f32 %v160_v18, %v2296_v15  ;;  %v162_v20 = vpop.f32.mrb[2].mxu0 }
 0x12a   :  { %v163_v21 = vpop.f32.mrb[3].mxu0  ;;  %v168_v22 = vmul.f32 %v159_v17, %v159_v17 }
 0x12b   :  { %v165_v23 = vadd.f32 %v161_v19, %v159_v17  ;;  %v169_v24 = vmul.f32 %v161_v19, %v161_v19  ;;  %v332_v21 = vsub.s32 2, %v2358_v55 }
 0x12d   :  { %166 = vadd.xlane.f32.xlu0 %v165_v23  ;;  %v170_v25 = vadd.f32 %v169_v24, %v168_v22  ;;  %v351_v22 = vsub.s32 3, %v2358_v55  ;;  %v2404_v24 = vrot.slane %v2372_v61, %v332_v21 }
 0x12f   :  { %171 = vadd.xlane.f32.xlu1 %v170_v25  ;;  %v372_v25 = vsub.s32 5, %v2358_v55  ;;  %v2455_v55 = vrot.slane %v2372_v61, %v410_v58 }
 0x1ba   :  { %v167_v27 = vpop.xlane.xlu0 %166 }
 0x1bc   :  { %v172_v28 = vpop.xlane.xlu1 %171 }
 0x1bd   :  { %v174_v30 = vsel %vm173_vm2, %v167_v27, %v172_v28  ;;  %v2408_v28 = vrot.slane %v2366_v59, %v332_v21 }
 0x1be   :  { %1886 = vmatpush3.msra.mxu0 %v174_v30  ;;  %v2412_v30 = vrot.slane %v2372_v61, %v351_v22 }
 0x1bf   :  { %1888 = vmatmul.mubr.msk.f32.vlgmr.msra.gmra.mrb[4].mxu0 %vm175_vm3, %v2306_v29  ;;  %1890 = vmatprep.subr.mxu0 %v2159_v26 }
 0x1c0   :  { %1892 = vmatprep.mubr.msk.f32.mxu0 %vm2160_vm1, %v2159_v26 }
 0x292   :  { %v245_v31 = vpop.f32.mrb[4].mxu0 }
 0x293   :  { %v249_v32 = vmul.f32 %v245_v31, %v245_v31  ;;  %v1889_v33 = vpop.f32.mrb[5].mxu0 }
 0x295   :  { %251 = vrot.lane.b32.xlu1 %v249_v32, %s2161_s17 }
 0x307   :  { %v252_v34 = vpop.permute.xlu1 %251 }
 0x308   :  { %v254_v35 = vsub.f32 %v245_v31, %v252_v34 }
 0x30a   :  { %v255_v36 = vadd.f32 1e-05, %v254_v35 }
 0x30c   :  { %1993 = vrsqrt.f32 %v255_v36 }
 0x316   :  { %v1994_v38 = vpop.eup %1993 }
 0x317   :  { %v257_v39 = vmul.f32 %v1994_v38, %v2289_v12  ;;  %v2427_v38 = vrot.slane %v2372_v61, %v372_v25 }
 0x319   :  { %259 = vrot.lane.b32.xlu1 %v257_v39, %s2163_s6 }
 0x38b   :  { %v260_v40 = vpop.permute.xlu1 %259 }
 0x38c   :  { %v262_v41 = vmul.f32 %v260_v40, %v245_v31  ;;  %v2415_v31 = vrot.slane %v2366_v59, %v351_v22 }
 0x38e   :  { %264 = vrot.lane.b32.xlu1 %v262_v41, %s2164_s18 }
 0x392   :  { %269 = vperm.xlu1 %1976, %v257_v39   ;;  %v2430_v39 = vrot.slane %v2366_v59, %v372_v25 }
 0x396   :  { %1977 = vset.pattern.permute.xlu1 %v2975_v42 }
 0x400   :  { %v265_v43 = vpop.permute.xlu1 %264 }
 0x401   :  { %v267_v44 = vsub.f32 %v2289_v12, %v265_v43 }
 0x403   :  { %276 = vperm.xlu1 %1977, %v267_v44  }
 0x411   :  { %v270_v45 = vpop.permute.xlu1 %269 }
 0x412   :  { %v272_v46 = vmul.f32 %v270_v45, %v159_v17  ;;  %v273_v47 = vmul.f32 %v270_v45, %v161_v19 }
 0x482   :  { %v277_v48 = vpop.permute.xlu1 %276 }
 0x483   :  { %v279_v49 = vadd.f32 %v277_v48, %v272_v46  ;;  %v280_v50 = vadd.f32 %v277_v48, %v273_v47 }
 0x485   :  { %v2321_v51 = vmax.f32 %v279_v49, 0.0  ;;  %v2323_v52 = vmax.f32 %v280_v50, 0.0 }
 0x487   :  { %285 = vrot.lane.b32.xlu1 %v2323_v52, %s2166_s19  ;;  %283 = vrot.lane.b32.xlu0 %v2321_v51, %s2166_s19 }
 0x48b   :  { %304 = vrot.lane.b32.xlu1 %v2321_v51, %s2155_s10  ;;  %342 = vrot.lane.b32.xlu0 %v2321_v51, %s2161_s17 }
 0x48f   :  { %306 = vrot.lane.b32.xlu1 %v2323_v52, %s2155_s10  ;;  %363 = vrot.lane.b32.xlu0 %v2321_v51, %s2163_s6 }
 0x493   :  { %323 = vrot.lane.b32.xlu1 %v2321_v51, %s2167_s20  ;;  %382 = vrot.lane.b32.xlu0 %v2321_v51, %s2168_s21 }
 0x497   :  { %325 = vrot.lane.b32.xlu1 %v2323_v52, %s2167_s20  ;;  %401 = vrot.lane.b32.xlu0 %v2321_v51, %s2169_s22 }
 0x49b   :  { %344 = vrot.lane.b32.xlu1 %v2323_v52, %s2161_s17  ;;  %420 = vrot.lane.b32.xlu0 %v2321_v51, %s2170_s23 }
 0x49f   :  { %365 = vrot.lane.b32.xlu1 %v2323_v52, %s2163_s6  ;;  %468 = vperm.xlu0 %1978, %v2289_v12  }
 0x4a3   :  { %384 = vrot.lane.b32.xlu1 %v2323_v52, %s2168_s21 }
 0x4a7   :  { %403 = vrot.lane.b32.xlu1 %v2323_v52, %s2169_s22 }
 0x4ab   :  { %422 = vrot.lane.b32.xlu1 %v2323_v52, %s2170_s23 }
 0x4f9   :  { %v286_v56 = vpop.permute.xlu1 %285  ;;  %v284_v62 = vpop.permute.xlu0 %283 }
 0x4fa   :  { %v291_v5 = vsel %vm289_vm4, %v286_v56, %v284_v62  ;;  %v290_v6 = vsel %vm289_vm4, %v284_v62, %v286_v56 }
 0x4fb   :  { %v301_v10 = vmul.f32 %v2376_v1, %v290_v6  ;;  %v300_v13 = vmul.f32 %v2383_v3, %v291_v5  ;;  %v2448_v5 = vrot.slane %v2372_v61, %v391_v53 }
 0x4fd   :  { %v305_v63 = vpop.permute.xlu1 %304  ;;  %v343_v17 = vpop.permute.xlu0 %342 }
 0x501   :  { %v307_v7 = vpop.permute.xlu1 %306  ;;  %v364_v27 = vpop.permute.xlu0 %363 }
 0x502   :  { %v310_v8 = vsel %vm308_vm5, %v307_v7, %v305_v63  ;;  %v309_v9 = vsel %vm308_vm5, %v305_v63, %v307_v7  ;;  %v2451_v7 = vrot.slane %v2366_v59, %v391_v53 }
 0x503   :  { %v320_v11 = vmul.f32 %v2380_v2, %v309_v9  ;;  %v319_v16 = vmul.f32 %v2386_v4, %v310_v8  ;;  %v2458_v8 = vrot.slane %v2366_v59, %v410_v58 }
 0x505   :  { %v324_v18 = vpop.permute.xlu1 %323  ;;  %v458_v19 = vpack.c.bf16 %v320_v11, %v301_v10  ;;  %v457_v20 = vpack.c.bf16 %v319_v16, %v300_v13  ;;  %v383_v45 = vpop.permute.xlu0 %382 }
 0x507   :  { %482 = vmatprep.subr.bf16.mxu1 %v458_v19 }
 0x508   :  { %483 = vmatpush1.bf16.msra.mxu1 %v457_v20 }
 0x509   :  { %v326_v23 = vpop.permute.xlu1 %325  ;;  %v402_v6 = vpop.permute.xlu0 %401 }
 0x50a   :  { %v328_v32 = vsel %vm327_vm6, %v324_v18, %v326_v23  ;;  %v329_v33 = vsel %vm327_vm6, %v326_v23, %v324_v18  ;;  %v2481_v18 = vld [vmem:[%s2973_s8 + $0x10] ss:$0 sm:$0xff] }
 0x50b   :  { %v338_v40 = vmul.f32 %v2404_v24, %v329_v33  ;;  %v339_v41 = vmul.f32 %v2408_v28, %v328_v32 }
 0x50d   :  { %v345_v34 = vpop.permute.xlu1 %344  ;;  %v421_v19 = vpop.permute.xlu0 %420 }
 0x50e   :  { %v347_v35 = vsel %vm346_vm7, %v343_v17, %v345_v34  ;;  %v348_v36 = vsel %vm346_vm7, %v345_v34, %v343_v17  ;;  %v2476_v17 = vld [vmem:[%s2973_s8 + $0x18] ss:$0 sm:$0xff]  ;;  %s2173_s8 = smov 3  }
 0x50f   :  { %v357_v43 = vmul.f32 %v2412_v30, %v348_v36  ;;  %v358_v44 = vmul.f32 %v2415_v31, %v347_v35  ;;  %v2491_v36 = vld [vmem:[#allocation8] sm:$0xf] }
 0x511   :  { %v366_v46 = vpop.permute.xlu1 %365  ;;  %v460_v47 = vpack.c.bf16 %v358_v44, %v339_v41  ;;  %v459_v48 = vpack.c.bf16 %v357_v43, %v338_v40 }
 0x512   :  { %v368_v49 = vsel %vm367_vm8, %v364_v27, %v366_v46  ;;  %v369_v50 = vsel %vm367_vm8, %v366_v46, %v364_v27 }
 0x513   :  { %v378_v54 = vmul.f32 %v2427_v38, %v368_v49  ;;  %v379_v56 = vmul.f32 %v2430_v39, %v369_v50  ;;  %484 = vmatprep.subr.bf16.mxu1 %v460_v47 }
 0x514   :  { %485 = vmatpush1.bf16.msra.mxu1 %v459_v48 }
 0x515   :  { %v385_v60 = vpop.permute.xlu1 %384  ;;  %v462_v62 = vpack.c.bf16 %v379_v56, %v2323_v52  ;;  %v461_v63 = vpack.c.bf16 %v378_v54, %v2321_v51 }
 0x516   :  { %v387_v52 = vsel %vm386_vm9, %v383_v45, %v385_v60  ;;  %v388_v51 = vsel %vm386_vm9, %v385_v60, %v383_v45 }
 0x517   :  { %486 = vmatprep.subr.bf16.mxu1 %v462_v62  ;;  %v397_v61 = vmul.f32 %v2448_v5, %v387_v52  ;;  %v398_v59 = vmul.f32 %v2451_v7, %v388_v51 }
 0x518   :  { %487 = vmatpush1.bf16.msra.mxu1 %v461_v63 }
 0x519   :  { %v404_v9 = vpop.permute.xlu1 %403 }
 0x51a   :  { %v406_v10 = vsel %vm405_vm10, %v402_v6, %v404_v9  ;;  %v407_v11 = vsel %vm405_vm10, %v404_v9, %v402_v6  ;;  %v2172_v9 = vmov 4  }
 0x51b   :  { %v416_v13 = vmul.f32 %v2455_v55, %v406_v10  ;;  %v417_v16 = vmul.f32 %v2458_v8, %v407_v11  ;;  %1979 = vset.pattern.permute.xlu0 %v2172_v9 }
 0x51d   :  { %v423_v20 = vpop.permute.xlu1 %422  ;;  %v464_v21 = vpack.c.bf16 %v417_v16, %v398_v59  ;;  %v463_v22 = vpack.c.bf16 %v416_v13, %v397_v61  ;;  %v2175_v59 = vmov 5  }
 0x51e   :  { %v425_v23 = vsel %vm424_vm11, %v421_v19, %v423_v20  ;;  %v426_v25 = vsel %vm424_vm11, %v423_v20, %v421_v19  ;;  %v2495_v40 = vpop.permute.xlu0 %468  ;;  %1980 = vset.pattern.permute.xlu1 %v2175_v59 }
 0x51f   :  { %v436_v27 = vmul.f32 %v2476_v17, %v426_v25  ;;  %488 = vmatprep.subr.bf16.mxu1 %v464_v21  ;;  %v435_v32 = vmul.f32 %v2481_v18, %v425_v23  ;;  %v2516_v21 = vld [vmem:[%s2970_s5] sm:$0xff]  ;;  %v2528_v23 = vld [vmem:[%s2970_s5 + $0x10] sm:$0xff]  ;;  %v2535_v25 = vld [vmem:[%s2970_s5 + $0x18] sm:$0xff] }
 0x520   :  { %489 = vmatpush1.bf16.msra.mxu1 %v463_v22  ;;  %v2521_v22 = vld [vmem:[%s2970_s5 + $0x8] sm:$0xff] }
 0x521   :  { %v466_v33 = vpack.c.bf16 %v436_v27, %v436_v27  ;;  %v465_v34 = vpack.c.bf16 %v435_v32, %v435_v32 }
 0x523   :  { %1837 = vmatprep.subr.msk.bf16.mxu1 %vm475_vm12, %v466_v33  ;;  %v477_v35 = vsel %vm475_vm12, %v465_v34, 0 }
 0x524   :  { %491 = vmatpush1.bf16.msra.mxu1 %v477_v35 }
 0x527   :  { %1838 = vmatmul.mubr.msk.bf16.vlgmr.msra.gmra.mrb[0].mxu1 %vm471_vm13, %v2491_v36 }
 0x5fa   :  { %v516_v41 = vpop.f32.mrb[0].mxu1 }
 0x5fb   :  { %v518_v43 = vpop.f32.mrb[1].mxu1  ;;  %v517_v44 = vadd.f32 %v516_v41, %v2495_v40 }
 0x5fc   :  { %v519_v45 = vadd.f32 %v518_v43, %v2495_v40  ;;  %v520_v46 = vpop.f32.mrb[2].mxu1  ;;  %v1032_v43 = vld [vmem:[#allocation3 + $0x48] sm:$0xff] }
 0x5fd   :  { %v521_v47 = vpop.f32.mrb[3].mxu1  ;;  %v526_v48 = vmul.f32 %v517_v44, %v517_v44  ;;  %v1034_v46 = vld [vmem:[#allocation3 + $0x58] sm:$0xff] }
 0x5fe   :  { %v523_v49 = vadd.f32 %v519_v45, %v517_v44  ;;  %v527_v50 = vmul.f32 %v519_v45, %v519_v45 }
 0x600   :  { %524 = vadd.xlane.f32.xlu1 %v523_v49  ;;  %v528_v53 = vadd.f32 %v527_v50, %v526_v48 }
 0x602   :  { %529 = vadd.xlane.f32.xlu0 %v528_v53  ;;  %v1040_v53 = vpack.c.bf16 %v1034_v46, %v1032_v43 }
 0x68d   :  { %v525_v54 = vpop.xlane.xlu1 %524 }
 0x68f   :  { %v530_v56 = vpop.xlane.xlu0 %529 }
 0x690   :  { %v531_v58 = vsel %vm173_vm2, %v525_v54, %v530_v56  ;;  %v1031_v54 = vld [vmem:[#allocation3 + $0x40] sm:$0xff]  ;;  %v1033_v56 = vld [vmem:[#allocation3 + $0x50] sm:$0xff] }
 0x691   :  { %1891 = vmatpush3.msra.mxu0 %v531_v58  ;;  %v1036_v58 = vld [vmem:[#allocation3 + $0x68] sm:$0xff] }
 0x692   :  { %1893 = vmatmul.mubr.msk.f32.vlgmr.msra.gmra.mrb[6].mxu0 %vm175_vm3, %v2306_v29 }
 0x693   :  { %716 = vmatprep.mubr.bf16.mxu0 %v2979_v0 }
 0x765   :  { %v598_v60 = vpop.f32.mrb[6].mxu0 }
 0x766   :  { %v602_v62 = vmul.f32 %v598_v60, %v598_v60  ;;  %v1894_v63 = vpop.f32.mrb[7].mxu0 }
 0x768   :  { %604 = vrot.lane.b32.xlu1 %v602_v62, %s2161_s17 }
 0x7da   :  { %v605_v6 = vpop.permute.xlu1 %604 }
 0x7db   :  { %v607_v52 = vsub.f32 %v598_v60, %v605_v6  ;;  %v1035_v6 = vld [vmem:[#allocation3 + $0x60] sm:$0xff] }
 0x7dd   :  { %v608_v51 = vadd.f32 1e-05, %v607_v52  ;;  %v1037_v52 = vld [vmem:[#allocation3 + $0x70] sm:$0xff] }
 0x7df   :  { %1995 = vrsqrt.f32 %v608_v51  ;;  %v1041_v51 = vpack.c.bf16 %v1037_v52, %v1035_v6 }
 0x7e9   :  { %v1996_v10 = vpop.eup %1995 }
 0x7ea   :  { %611 = vrot.lane.b32.xlu0 %v1996_v10, %s2173_s8  ;;  %v2552_v10 = vld [vmem:[%s2968_s3 + $0x8] sm:$0xff]  }
 0x85c   :  { %v612_v11 = vpop.permute.xlu0 %611 }
 0x85d   :  { %v614_v61 = vmul.f32 %v612_v11, %v2289_v12 }
 0x85f   :  { %626 = vperm.xlu0 %1979, %v614_v61   ;;  %616 = vrot.lane.b32.xlu1 %v614_v61, %s2174_s30 }
 0x863   :  { %1982 = vset.pattern.permute.xlu0 %v2979_v0 }
 0x864   :  { %649 = vperm.xlu0 %1982, %v2521_v22  }
 0x868   :  { %1984 = vset.pattern.permute.xlu0 %v2975_v42 }
 0x8d1   :  { %v617_v13 = vpop.permute.xlu1 %616 }
 0x8d2   :  { %v619_v16 = vmul.f32 %v617_v13, %v598_v60  ;;  %v1038_v60 = vld [vmem:[#allocation3 + $0x78] sm:$0xff] }
 0x8d3   :  { %v1042_v63 = vpack.c.bf16 %v1038_v60, %v1036_v58 }
 0x8d4   :  { %621 = vrot.lane.b32.xlu1 %v619_v16, %s2176_s11 }
 0x8de   :  { %v627_v27 = vpop.permute.xlu0 %626 }
 0x8df   :  { %v629_v32 = vmul.f32 %v627_v27, %v517_v44  ;;  %v630_v33 = vmul.f32 %v627_v27, %v519_v45  ;;  %v2544_v44 = vld [vmem:[%s2968_s3] sm:$0xff]   ;;  %v1039_v45 = vpack.c.bf16 %v1033_v56, %v1031_v54 }
 0x8e3   :  { %v2562_v13 = vpop.permute.xlu0 %649 }
 0x946   :  { %v622_v19 = vpop.permute.xlu1 %621 }
 0x947   :  { %v624_v20 = vsub.f32 %v2289_v12, %v622_v19 }
 0x949   :  { %633 = vperm.xlu1 %1980, %v624_v20  }
 0x94d   :  { %1981 = vset.pattern.permute.xlu1 %v2979_v0 }
 0x94e   :  { %644 = vperm.xlu1 %1981, %v2516_v21  }
 0x952   :  { %654 = vperm.xlu1 %1981, %v2528_v23  }
 0x956   :  { %659 = vperm.xlu1 %1981, %v2535_v25  }
 0x95a   :  { %1983 = vset.pattern.permute.xlu1 %v2977_v37 }
 0x9c8   :  { %v634_v34 = vpop.permute.xlu1 %633 }
 0x9c9   :  { %v636_v35 = vadd.f32 %v634_v34, %v629_v32  ;;  %v637_v41 = vadd.f32 %v634_v34, %v630_v33 }
 0x9cb   :  { %v638_v47 = vmax.f32 %v636_v35, 0.0  ;;  %v639_v48 = vmax.f32 %v637_v41, 0.0 }
 0x9cd   :  { %v640_v49 = vpack.c.bf16 %v638_v47, %v638_v47  ;;  %v641_v50 = vpack.c.bf16 %v639_v48, %v639_v48  ;;  %v2560_v11 = vpop.permute.xlu1 %644 }
 0x9cf   :  { %1842 = vmatprep.subr.msk.bf16.mxu0 %vm475_vm12, %v641_v50  ;;  %v679_v62 = vsel %vm475_vm12, %v640_v49, 0 }
 0x9d0   :  { %685 = vmatpush1.bf16.msra.mxu0 %v679_v62 }
 0x9d1   :  { %1043 = vmatprep.subr.bf16.mxu0 %v1040_v53 }
 0x9d3   :  { %1843 = vmatmul.mubr.msk.bf16.vlgmr.msra.gmra.mrb[8].mxu0 %vm175_vm3, %v2544_v44 }
 0x9d4   :  { %726 = vmatprep.mubr.bf16.mxu0 %v2979_v0  ;;  %1044 = vmatpush1.bf16.msra.mxu0 %v1039_v45 }
 0x9d5   :  { %1045 = vmatprep.subr.bf16.mxu0 %v1042_v63 }
 0x9d8   :  { %1046 = vmatpush1.bf16.msra.mxu0 %v1041_v51 }
 0x9db   :  { %1844 = vmatmul.mubr.msk.bf16.gmra.mrb[12].mxu0 %vm175_vm3, %v2552_v10 }
 0x9dc   :  { %1075 = vmatprep.mubr.bf16.mxu0 %v2979_v0 }
 0x9e3   :  { %1849 = vmatmul.mubr.msk.bf16.vlgmr.msra.gmra.mrb[16].mxu0 %vm120_vm0, %v2292_v14  ;;  %v2573_v14 = vpop.permute.xlu1 %654 }
 0x9e4   :  { %1345 = vmatprep.mubr.bf16.mxu0 %v2979_v0 }
 0x9e7   :  { %v2593_v56 = vpop.permute.xlu1 %659 }
 0xaa6   :  { %v718_v61 = vpop.f32.mrb[8].mxu0 }
 0xaa7   :  { %v2565_v16 = vadd.f32 %v718_v61, %v2560_v11  ;;  %v720_v19 = vpop.f32.mrb[9].mxu0 }
 0xaa8   :  { %v2568_v20 = vadd.f32 %v720_v19, %v2560_v11  ;;  %v722_v27 = vpop.f32.mrb[10].mxu0 }
 0xaa9   :  { %v2571_v32 = vadd.f32 %v722_v27, %v2562_v13  ;;  %v724_v33 = vpop.f32.mrb[11].mxu0  ;;  %v749_v41 = vmul.f32 %v2565_v16, %v2565_v16 }
 0xaaa   :  { %v2576_v34 = vadd.f32 %v724_v33, %v2562_v13  ;;  %v737_v35 = vadd.f32 %v2568_v20, %v2565_v16  ;;  %v750_v43 = vmul.f32 %v2568_v20, %v2568_v20 }
 0xaab   :  { %v751_v47 = vmul.f32 %v2571_v32, %v2571_v32 }
 0xaac   :  { %738 = vadd.xlane.f32.xlu0 %v737_v35  ;;  %v740_v46 = vadd.f32 %v2576_v34, %v2571_v32  ;;  %v752_v48 = vmul.f32 %v2576_v34, %v2576_v34  ;;  %v757_v50 = vadd.f32 %v750_v43, %v749_v41 }
 0xaae   :  { %v728_v49 = vpop.f32.mrb[12].mxu0  ;;  %741 = vadd.xlane.f32.xlu1 %v740_v46  ;;  %v760_v63 = vadd.f32 %v752_v48, %v751_v47 }
 0xaaf   :  { %v2591_v53 = vadd.f32 %v728_v49, %v2573_v14  ;;  %v730_v54 = vpop.f32.mrb[13].mxu0 }
 0xab0   :  { %v2596_v58 = vadd.f32 %v730_v54, %v2573_v14  ;;  %v732_v60 = vpop.f32.mrb[14].mxu0  ;;  %758 = vadd.xlane.f32.xlu0 %v757_v50 }
 0xab1   :  { %2983 = vst [vmem:[#allocation16_spill] sm:$0xff] %v2591_v53  ;;  %v2599_v62 = vadd.f32 %v732_v60, %v2593_v56  ;;  %v734_v45 = vpop.f32.mrb[15].mxu0  ;;  %v753_v51 = vmul.f32 %v2591_v53, %v2591_v53 }
 0xab2   :  { %2984 = vst [vmem:[#allocation17_spill] sm:$0xff] %v2596_v58  ;;  %v2602_v6 = vadd.f32 %v734_v45, %v2593_v56  ;;  %v743_v52 = vadd.f32 %v2596_v58, %v2591_v53  ;;  %v754_v61 = vmul.f32 %v2596_v58, %v2596_v58 }
 0xab3   :  { %v755_v35 = vmul.f32 %v2599_v62, %v2599_v62 }
 0xab4   :  { %744 = vadd.xlane.f32.xlu1 %v743_v52  ;;  %761 = vadd.xlane.f32.xlu0 %v760_v63  ;;  %v763_v27 = vadd.f32 %v754_v61, %v753_v51  ;;  %v746_v33 = vadd.f32 %v2602_v6, %v2599_v62  ;;  %v756_v41 = vmul.f32 %v2602_v6, %v2602_v6 }
 0xab6   :  { %v1077_v19 = vpop.f32.mrb[16].mxu0  ;;  %v766_v54 = vadd.f32 %v756_v41, %v755_v35 }
 0xab7   :  { %v2617_v43 = vadd.f32 %v1077_v19, %v2296_v15  ;;  %v1079_v46 = vpop.f32.mrb[17].mxu0 }
 0xab8   :  { %v2620_v47 = vadd.f32 %v1079_v46, %v2296_v15  ;;  %764 = vadd.xlane.f32.xlu1 %v763_v27  ;;  %747 = vadd.xlane.f32.xlu0 %v746_v33  ;;  %v1081_v48 = vpop.f32.mrb[18].mxu0  ;;  %v2631_v15 = vld [vmem:[%s2972_s7] sm:$0xff] }
 0xab9   :  { %v1082_v49 = vpop.f32.mrb[19].mxu0  ;;  %v1087_v60 = vmul.f32 %v2617_v43, %v2617_v43  ;;  %1903 = vmatprep.mubr.msk.f32.mxu1 %vm120_vm0, %v2631_v15 }
 0xaba   :  { %v1084_v50 = vadd.f32 %v2620_v47, %v2617_v43  ;;  %v1088_v45 = vmul.f32 %v2620_v47, %v2620_v47 }
 0xabc   :  { %1085 = vadd.xlane.f32.xlu1 %v1084_v50  ;;  %767 = vadd.xlane.f32.xlu0 %v766_v54  ;;  %v1089_v63 = vadd.f32 %v1088_v45, %v1087_v60 }
 0xac0   :  { %1090 = vadd.xlane.f32.xlu0 %v1089_v63  ;;  %v2642_v63 = vld [vmem:[%s2972_s7 + $0x8] sm:$0xff] }
 0xb39   :  { %v739_v52 = vpop.xlane.xlu0 %738 }
 0xb3b   :  { %v742_v51 = vpop.xlane.xlu1 %741 }
 0xb3d   :  { %v759_v61 = vpop.xlane.xlu0 %758 }
 0xb3e   :  { %v769_v33 = vsel %vm173_vm2, %v739_v52, %v759_v61  ;;  %v2648_v52 = vld [vmem:[%s2972_s7 + $0x10] sm:$0xff] }
 0xb41   :  { %v745_v19 = vpop.xlane.xlu1 %744  ;;  %v762_v27 = vpop.xlane.xlu0 %761 }
 0xb42   :  { %v770_v35 = vsel %vm173_vm2, %v742_v51, %v762_v27 }
 0xb43   :  { %v1933_v41 = vpack.c.bf16 %v770_v35, %v769_v33 }
 0xb45   :  { %1934 = vmatprep.subr.bf16.mxu1 %v1933_v41  ;;  %v748_v46 = vpop.xlane.xlu0 %747  ;;  %v765_v48 = vpop.xlane.xlu1 %764 }
 0xb46   :  { %1936 = vmatpush3.bf16.msra.mxu1 %v1933_v41  ;;  %v771_v50 = vsel %vm173_vm2, %v745_v19, %v765_v48  ;;  %v2658_v19 = vld [vmem:[%s2972_s7 + $0x18] sm:$0xff]  ;;  %s2177_s7 = smov [#allocation11]  }
 0xb49   :  { %v768_v49 = vpop.xlane.xlu0 %767  ;;  %v1086_v51 = vpop.xlane.xlu1 %1085 }
 0xb4a   :  { %v772_v54 = vsel %vm173_vm2, %v748_v46, %v768_v49 }
 0xb4b   :  { %v1937_v60 = vpack.c.bf16 %v772_v54, %v771_v50 }
 0xb4d   :  { %1938 = vmatprep.subr.bf16.mxu1 %v1937_v60  ;;  %v1091_v45 = vpop.xlane.xlu0 %1090 }
 0xb4e   :  { %1940 = vmatpush3.bf16.msra.mxu1 %v1937_v60  ;;  %v1092_v61 = vsel %vm173_vm2, %v1086_v51, %v1091_v45 }
 0xb4f   :  { %1909 = vmatprep.subr.mxu1 %v2159_v26 }
 0xb51   :  { %1904 = vmatmul.mubr.msk.f32.vlgmr.msra.gmra.mrb[4].mxu1 %vm120_vm0, %v2642_v63 }
 0xb52   :  { %1910 = vmatpush3.msra.mxu1 %v1092_v61  ;;  %1906 = vmatprep.mubr.msk.f32.mxu1 %vm120_vm0, %v2648_v52 }
 0xb53   :  { %1914 = vmatprep.subr.mxu1 %v2159_v26 }
 0xb55   :  { %1907 = vmatmul.mubr.msk.f32.gmra.mrb[6].mxu1 %vm120_vm0, %v2658_v19 }
 0xb56   :  { %1911 = vmatprep.mubr.msk.f32.mxu1 %vm2160_vm1, %v2159_v26 }
 0xb59   :  { %1912 = vmatmul.mubr.msk.f32.vlgmr.msra.gmra.mrb[8].mxu1 %vm175_vm3, %v2306_v29 }
 0xb5a   :  { %1916 = vmatprep.mubr.msk.f32.mxu1 %vm2160_vm1, %v2159_v26 }
 0xc24   :  { %v2669_v27 = vpop.f32.mrb[4].mxu1 }
 0xc25   :  { %v2671_v33 = vpop.f32.mrb[5].mxu1 }
 0xc28   :  { %v2673_v35 = vpop.f32.mrb[6].mxu1 }
 0xc29   :  { %v2675_v41 = vpop.f32.mrb[7].mxu1 }
 0xc2c   :  { %v1159_v46 = vpop.f32.mrb[8].mxu1 }
 0xc2d   :  { %v1163_v48 = vmul.f32 %v1159_v46, %v1159_v46  ;;  %v1913_v49 = vpop.f32.mrb[9].mxu1 }
 0xc2f   :  { %1165 = vrot.lane.b32.xlu1 %v1163_v48, %s2161_s17 }
 0xca1   :  { %v1166_v50 = vpop.permute.xlu1 %1165 }
 0xca2   :  { %v1168_v54 = vsub.f32 %v1159_v46, %v1166_v50 }
 0xca4   :  { %v1169_v60 = vadd.f32 1e-05, %v1168_v54 }
 0xca6   :  { %1997 = vrsqrt.f32 %v1169_v60 }
 0xcb0   :  { %v1998_v45 = vpop.eup %1997 }
 0xcb1   :  { %v1171_v26 = vmul.f32 %v1998_v45, %v2289_v12 }
 0xcb3   :  { %1173 = vrot.lane.b32.xlu0 %v1171_v26, %s2163_s6 }
 0xd25   :  { %v1174_v51 = vpop.permute.xlu0 %1173 }
 0xd26   :  { %v1176_v61 = vmul.f32 %v1174_v51, %v1159_v46 }
 0xd28   :  { %1178 = vrot.lane.b32.xlu1 %v1176_v61, %s2164_s18 }
 0xd2c   :  { %1183 = vperm.xlu1 %1983, %v1171_v26  }
 0xd30   :  { %1986 = vset.pattern.permute.xlu1 %v2175_v59 }
 0xd9a   :  { %v1179_v42 = vpop.permute.xlu1 %1178 }
 0xd9b   :  { %v1181_v49 = vsub.f32 %v2289_v12, %v1179_v42 }
 0xd9d   :  { %1190 = vperm.xlu0 %1984, %v1181_v49  }
 0xda1   :  { %1985 = vset.pattern.permute.xlu0 %v2172_v9 }
 0xdab   :  { %v1184_v48 = vpop.permute.xlu1 %1183 }
 0xdac   :  { %v1186_v50 = vmul.f32 %v1184_v48, %v2617_v43  ;;  %v1187_v60 = vmul.f32 %v1184_v48, %v2620_v47 }
 0xe1c   :  { %v1191_v54 = vpop.permute.xlu0 %1190 }
 0xe1d   :  { %v1193_v45 = vadd.f32 %v1191_v54, %v1186_v50  ;;  %v1194_v37 = vadd.f32 %v1191_v54, %v1187_v60 }
 0xe1f   :  { %v2686_v46 = vmax.f32 %v1193_v45, 0.0  ;;  %v1196_v12 = vmax.f32 %v1194_v37, 0.0 }
 0xe21   :  { %1207 = vrot.lane.b32.xlu0 %v2686_v46, %s2155_s10  ;;  %1197 = vrot.lane.b32.xlu1 %v2686_v46, %s2166_s19 }
 0xe25   :  { %1217 = vrot.lane.b32.xlu0 %v2686_v46, %s2167_s20  ;;  %1199 = vrot.lane.b32.xlu1 %v1196_v12, %s2166_s19 }
 0xe29   :  { %1227 = vrot.lane.b32.xlu0 %v2686_v46, %s2161_s17  ;;  %1209 = vrot.lane.b32.xlu1 %v1196_v12, %s2155_s10 }
 0xe2d   :  { %1239 = vrot.lane.b32.xlu0 %v2686_v46, %s2163_s6  ;;  %1219 = vrot.lane.b32.xlu1 %v1196_v12, %s2167_s20 }
 0xe31   :  { %1249 = vrot.lane.b32.xlu0 %v2686_v46, %s2168_s21  ;;  %1229 = vrot.lane.b32.xlu1 %v1196_v12, %s2161_s17 }
 0xe35   :  { %1259 = vrot.lane.b32.xlu0 %v2686_v46, %s2169_s22  ;;  %1241 = vrot.lane.b32.xlu1 %v1196_v12, %s2163_s6 }
 0xe39   :  { %1269 = vrot.lane.b32.xlu0 %v2686_v46, %s2170_s23  ;;  %1251 = vrot.lane.b32.xlu1 %v1196_v12, %s2168_s21 }
 0xe3d   :  { %1261 = vrot.lane.b32.xlu1 %v1196_v12, %s2169_s22 }
 0xe41   :  { %1271 = vrot.lane.b32.xlu1 %v1196_v12, %s2170_s23 }
 0xe93   :  { %v1208_v37 = vpop.permute.xlu0 %1207  ;;  %v1198_v42 = vpop.permute.xlu1 %1197 }
 0xe97   :  { %v1218_v9 = vpop.permute.xlu0 %1217  ;;  %v1200_v59 = vpop.permute.xlu1 %1199 }
 0xe98   :  { %v1201_v43 = vsel %vm289_vm4, %v1198_v42, %v1200_v59  ;;  %v1202_v47 = vsel %vm289_vm4, %v1200_v59, %v1198_v42 }
 0xe99   :  { %v1203_v48 = vmul.f32 %v1202_v47, %v2383_v3  ;;  %v1204_v50 = vmul.f32 %v1201_v43, %v2376_v1 }
 0xe9b   :  { %v1228_v26 = vpop.permute.xlu0 %1227  ;;  %v1210_v51 = vpop.permute.xlu1 %1209 }
 0xe9c   :  { %v1211_v61 = vsel %vm308_vm5, %v1208_v37, %v1210_v51  ;;  %v1212_v49 = vsel %vm308_vm5, %v1210_v51, %v1208_v37 }
 0xe9d   :  { %v1213_v54 = vmul.f32 %v1212_v49, %v2386_v4  ;;  %v1214_v60 = vmul.f32 %v1211_v61, %v2380_v2 }
 0xe9f   :  { %v1297_v45 = vpack.c.bf16 %v1213_v54, %v1203_v48  ;;  %v1220_v0 = vpop.permute.xlu1 %1219  ;;  %v1298_v58 = vpack.c.bf16 %v1214_v60, %v1204_v50  ;;  %v1240_v42 = vpop.permute.xlu0 %1239 }
 0xea0   :  { %v1221_v59 = vsel %vm327_vm6, %v1218_v9, %v1220_v0  ;;  %v1222_v53 = vsel %vm327_vm6, %v1220_v0, %v1218_v9 }
 0xea1   :  { %1313 = vmatprep.subr.bf16.mxu0 %v1298_v58  ;;  %v1223_v2 = vmul.f32 %v1222_v53, %v2404_v24  ;;  %v1224_v4 = vmul.f32 %v1221_v59, %v2408_v28 }
 0xea2   :  { %1314 = vmatpush1.bf16.msra.mxu0 %v1297_v45 }
 0xea3   :  { %v1230_v37 = vpop.permute.xlu1 %1229  ;;  %v1250_v47 = vpop.permute.xlu0 %1249 }
 0xea4   :  { %v1231_v1 = vsel %vm346_vm7, %v1228_v26, %v1230_v37  ;;  %v1232_v3 = vsel %vm346_vm7, %v1230_v37, %v1228_v26 }
 0xea5   :  { %v1233_v58 = vmul.f32 %v1232_v3, %v2412_v30  ;;  %v1234_v43 = vmul.f32 %v1231_v1, %v2415_v31 }
 0xea7   :  { %v1299_v51 = vpack.c.bf16 %v1233_v58, %v1223_v2  ;;  %v1242_v61 = vpop.permute.xlu1 %1241  ;;  %v1300_v0 = vpack.c.bf16 %v1234_v43, %v1224_v4  ;;  %v1260_v53 = vpop.permute.xlu0 %1259 }
 0xea8   :  { %v1243_v9 = vsel %vm367_vm8, %v1240_v42, %v1242_v61  ;;  %v1244_v49 = vsel %vm367_vm8, %v1242_v61, %v1240_v42 }
 0xea9   :  { %v1245_v26 = vmul.f32 %v1243_v9, %v2427_v38  ;;  %v1246_v24 = vmul.f32 %v1244_v49, %v2430_v39  ;;  %1315 = vmatprep.subr.bf16.mxu0 %v1300_v0 }
 0xeaa   :  { %1316 = vmatpush1.bf16.msra.mxu0 %v1299_v51 }
 0xeab   :  { %v1301_v28 = vpack.c.bf16 %v1245_v26, %v2686_v46  ;;  %v1252_v30 = vpop.permute.xlu1 %1251  ;;  %v1302_v31 = vpack.c.bf16 %v1246_v24, %v1196_v12  ;;  %v1270_v42 = vpop.permute.xlu0 %1269 }
 0xeac   :  { %v1253_v48 = vsel %vm386_vm9, %v1250_v47, %v1252_v30  ;;  %v1254_v50 = vsel %vm386_vm9, %v1252_v30, %v1250_v47 }
 0xead   :  { %1317 = vmatprep.subr.bf16.mxu0 %v1302_v31  ;;  %v1255_v46 = vmul.f32 %v1253_v48, %v2448_v5  ;;  %v1256_v12 = vmul.f32 %v1254_v50, %v2451_v7 }
 0xeae   :  { %1318 = vmatpush1.bf16.msra.mxu0 %v1301_v28 }
 0xeaf   :  { %v1262_v54 = vpop.permute.xlu1 %1261 }
 0xeb0   :  { %v1263_v38 = vsel %vm405_vm10, %v1260_v53, %v1262_v54  ;;  %v1264_v39 = vsel %vm405_vm10, %v1262_v54, %v1260_v53 }
 0xeb1   :  { %v1265_v60 = vmul.f32 %v1263_v38, %v2455_v55  ;;  %v1266_v45 = vmul.f32 %v1264_v39, %v2458_v8  ;;  %v2017_v38 = vld [vmem:[#allocation9] sm:$0xff] }
 0xeb3   :  { %v1303_v59 = vpack.c.bf16 %v1265_v60, %v1255_v46  ;;  %v1272_v37 = vpop.permute.xlu1 %1271  ;;  %v1304_v1 = vpack.c.bf16 %v1266_v45, %v1256_v12 }
 0xeb4   :  { %v1273_v3 = vsel %vm424_vm11, %v1270_v42, %v1272_v37  ;;  %v1274_v2 = vsel %vm424_vm11, %v1272_v37, %v1270_v42 }
 0xeb5   :  { %v1275_v4 = vmul.f32 %v2481_v18, %v1273_v3  ;;  %v1276_v5 = vmul.f32 %v2476_v17, %v1274_v2  ;;  %1319 = vmatprep.subr.bf16.mxu0 %v1304_v1 }
 0xeb6   :  { %1320 = vmatpush1.bf16.msra.mxu0 %v1303_v59 }
 0xeb7   :  { %v1305_v7 = vpack.c.bf16 %v1275_v4, %v1275_v4  ;;  %v1306_v55 = vpack.c.bf16 %v1276_v5, %v1276_v5 }
 0xeb9   :  { %1851 = vmatprep.subr.msk.bf16.mxu0 %vm475_vm12, %v1306_v55  ;;  %v1308_v8 = vsel %vm475_vm12, %v1305_v7, 0 }
 0xeba   :  { %1322 = vmatpush1.bf16.msra.mxu0 %v1308_v8 }
 0xebd   :  { %1852 = vmatmul.mubr.msk.bf16.vlgmr.msra.gmra.mrb[20].mxu0 %vm471_vm13, %v2491_v36  ;;  %v2985_v36 = vmov 0  }
 0xf90   :  { %v1347_v58 = vpop.f32.mrb[20].mxu0 }
 0xf91   :  { %v1348_v57 = vadd.f32 %v1347_v58, %v2495_v40  ;;  %v1349_v43 = vpop.f32.mrb[21].mxu0 }
 0xf92   :  { %v1350_v18 = vadd.f32 %v1349_v43, %v2495_v40  ;;  %v1351_v47 = vpop.f32.mrb[22].mxu0 }
 0xf93   :  { %v1352_v17 = vpop.f32.mrb[23].mxu0  ;;  %v1357_v51 = vmul.f32 %v1348_v57, %v1348_v57 }
 0xf94   :  { %v1354_v61 = vadd.f32 %v1350_v18, %v1348_v57  ;;  %v1358_v0 = vmul.f32 %v1350_v18, %v1350_v18 }
 0xf96   :  { %1355 = vadd.xlane.f32.xlu0 %v1354_v61  ;;  %v1359_v9 = vadd.f32 %v1358_v0, %v1357_v51 }
 0xf98   :  { %1360 = vadd.xlane.f32.xlu1 %v1359_v9 }
0x1023   :  { %v1356_v49 = vpop.xlane.xlu0 %1355 }
0x1025   :  { %v1361_v26 = vpop.xlane.xlu1 %1360 }
0x1026   :  { %v1362_v24 = vsel %vm173_vm2, %v1356_v49, %v1361_v26 }
0x1027   :  { %1915 = vmatpush3.msra.mxu1 %v1362_v24 }
0x1028   :  { %1917 = vmatmul.mubr.msk.f32.vlgmr.msra.gmra.mrb[10].mxu1 %vm175_vm3, %v2306_v29  ;;  %v2986_v29 = vmov 1  }
0x1029   :  { %1511 = vmatprep.mubr.bf16.mxu1 %v2985_v36 }
0x10fb   :  { %v1429_v28 = vpop.f32.mrb[10].mxu1 }
0x10fc   :  { %v1433_v40 = vmul.f32 %v1429_v28, %v1429_v28  ;;  %v1918_v30 = vpop.f32.mrb[11].mxu1 }
0x10fe   :  { %1435 = vrot.lane.b32.xlu0 %v1433_v40, %s2161_s17 }
0x1170   :  { %v1436_v31 = vpop.permute.xlu0 %1435 }
0x1171   :  { %v1438_v53 = vsub.f32 %v1429_v28, %v1436_v31 }
0x1173   :  { %v1439_v48 = vadd.f32 1e-05, %v1438_v53 }
0x1175   :  { %1999 = vrsqrt.f32 %v1439_v48 }
0x117f   :  { %v2000_v50 = vpop.eup %1999 }
0x1180   :  { %1442 = vrot.lane.b32.xlu1 %v2000_v50, %s2173_s8 }
0x11f2   :  { %v1443_v54 = vpop.permute.xlu1 %1442 }
0x11f3   :  { %v1445_v39 = vmul.f32 %v2017_v38, %v1443_v54 }
0x11f5   :  { %1447 = vrot.lane.b32.xlu0 %v1445_v39, %s2174_s30 }
0x11f9   :  { %1457 = vperm.xlu0 %1985, %v1445_v39  }
0x11fd   :  { %1988 = vset.pattern.permute.xlu0 %v2986_v29 }
0x1267   :  { %v1448_v46 = vpop.permute.xlu0 %1447 }
0x1268   :  { %v1450_v12 = vmul.f32 %v1448_v46, %v1429_v28  ;;  %v871_v46 = vmul.f32 %v2669_v27, %v2669_v27 }
0x126a   :  { %1452 = vrot.lane.b32.xlu1 %v1450_v12, %s2176_s11  ;;  %v872_v12 = vmul.f32 %v2675_v41, %v2675_v41 }
0x1278   :  { %v1458_v42 = vpop.permute.xlu0 %1457 }
0x1279   :  { %v1460_v59 = vmul.f32 %v1458_v42, %v1348_v57  ;;  %v1461_v37 = vmul.f32 %v1458_v42, %v1350_v18 }
0x12dc   :  { %v1453_v60 = vpop.permute.xlu1 %1452 }
0x12dd   :  { %v1455_v45 = vsub.f32 %v2017_v38, %v1453_v60  ;;  %v870_v60 = vmul.f32 %v2671_v33, %v2671_v33 }
0x12df   :  { %1464 = vperm.xlu1 %1986, %v1455_v45   ;;  %v873_v45 = vmul.f32 %v2673_v35, %v2673_v35 }
0x12e3   :  { %1987 = vset.pattern.permute.xlu1 %v2986_v29 }
0x135e   :  { %v1465_v1 = vpop.permute.xlu1 %1464 }
0x135f   :  { %v1467_v3 = vadd.f32 %v1465_v1, %v1460_v59  ;;  %v1468_v2 = vadd.f32 %v1465_v1, %v1461_v37 }
0x1361   :  { %v1469_v4 = vmax.f32 %v1467_v3, 0.0  ;;  %v1470_v5 = vmax.f32 %v1468_v2, 0.0 }
0x1363   :  { %v1471_v7 = vpack.c.bf16 %v1469_v4, %v1469_v4  ;;  %v1472_v55 = vpack.c.bf16 %v1470_v5, %v1470_v5 }
0x1365   :  { %1854 = vmatprep.subr.msk.bf16.mxu1 %vm475_vm12, %v1472_v55  ;;  %v1474_v8 = vsel %vm475_vm12, %v1471_v7, 0 }
0x1366   :  { %1480 = vmatpush1.bf16.msra.mxu1 %v1474_v8 }
0x1369   :  { %1855 = vmatmul.mubr.msk.bf16.vlgmr.msra.gmra.mrb[12].mxu1 %vm175_vm3, %v2544_v44 }
0x136a   :  { %1521 = vmatprep.mubr.bf16.mxu1 %v2985_v36 }
0x1371   :  { %1856 = vmatmul.mubr.msk.bf16.gmra.mrb[16].mxu1 %vm175_vm3, %v2552_v10 }
0x1372   :  { %1927 = vmatprep.mubr.msk.f32.mxu1 %vm120_vm0, %v2631_v15 }
0x143c   :  { %v1513_v58 = vpop.f32.mrb[12].mxu1 }
0x143d   :  { %v2787_v57 = vadd.f32 %v1513_v58, %v2560_v11  ;;  %v1515_v43 = vpop.f32.mrb[13].mxu1 }
0x143e   :  { %v2790_v18 = vadd.f32 %v1515_v43, %v2560_v11  ;;  %v1517_v47 = vpop.f32.mrb[14].mxu1 }
0x143f   :  { %v2793_v17 = vadd.f32 %v1517_v47, %v2562_v13  ;;  %v1519_v44 = vpop.f32.mrb[15].mxu1  ;;  %v1544_v0 = vmul.f32 %v2787_v57, %v2787_v57 }
0x1440   :  { %v2796_v51 = vadd.f32 %v1519_v44, %v2562_v13  ;;  %v1532_v10 = vadd.f32 %v2790_v18, %v2787_v57  ;;  %v1545_v13 = vmul.f32 %v2790_v18, %v2790_v18 }
0x1441   :  { %v1546_v15 = vmul.f32 %v2793_v17, %v2793_v17 }
0x1442   :  { %1533 = vadd.xlane.f32.xlu1 %v1532_v10  ;;  %v1535_v61 = vadd.f32 %v2796_v51, %v2793_v17  ;;  %v1547_v11 = vmul.f32 %v2796_v51, %v2796_v51  ;;  %v1552_v40 = vadd.f32 %v1545_v13, %v1544_v0 }
0x1444   :  { %v1523_v9 = vpop.f32.mrb[16].mxu1  ;;  %1536 = vadd.xlane.f32.xlu0 %v1535_v61  ;;  %v1555_v49 = vadd.f32 %v1547_v11, %v1546_v15 }
0x1445   :  { %v2811_v26 = vadd.f32 %v1523_v9, %v2573_v14  ;;  %v1525_v24 = vpop.f32.mrb[17].mxu1 }
0x1446   :  { %v2814_v36 = vadd.f32 %v1525_v24, %v2573_v14  ;;  %v1527_v28 = vpop.f32.mrb[18].mxu1  ;;  %1556 = vadd.xlane.f32.xlu1 %v1555_v49 }
0x1447   :  { %v2817_v30 = vadd.f32 %v1527_v28, %v2593_v56  ;;  %v1529_v31 = vpop.f32.mrb[19].mxu1  ;;  %v1548_v50 = vmul.f32 %v2811_v26, %v2811_v26 }
0x1448   :  { %v2820_v53 = vadd.f32 %v1529_v31, %v2593_v56  ;;  %1553 = vadd.xlane.f32.xlu0 %v1552_v40  ;;  %v1538_v48 = vadd.f32 %v2814_v36, %v2811_v26  ;;  %v1549_v54 = vmul.f32 %v2814_v36, %v2814_v36 }
0x1449   :  { %v1550_v38 = vmul.f32 %v2817_v30, %v2817_v30 }
0x144a   :  { %v1541_v14 = vadd.f32 %v2820_v53, %v2817_v30  ;;  %v1551_v56 = vmul.f32 %v2820_v53, %v2820_v53  ;;  %v1558_v39 = vadd.f32 %v1549_v54, %v1548_v50 }
0x144c   :  { %1539 = vadd.xlane.f32.xlu0 %v1538_v48  ;;  %1542 = vadd.xlane.f32.xlu1 %v1541_v14  ;;  %v1561_v29 = vadd.f32 %v1551_v56, %v1550_v38 }
0x1450   :  { %1559 = vadd.xlane.f32.xlu0 %v1558_v39  ;;  %1562 = vadd.xlane.f32.xlu1 %v1561_v29 }
0x1461   :  { %880 = vrot.lane.b32.xlu1 %v871_v46, %s2161_s17 }
0x1465   :  { %882 = vrot.lane.b32.xlu1 %v872_v12, %s2161_s17 }
0x1466   :  { %878 = vrot.lane.b32.xlu0 %v870_v60, %s2161_s17 }
0x146a   :  { %884 = vrot.lane.b32.xlu0 %v873_v45, %s2161_s17 }
0x14cf   :  { %v1534_v42 = vpop.xlane.xlu1 %1533 }
0x14d1   :  { %v1537_v59 = vpop.xlane.xlu0 %1536 }
0x14d3   :  { %v1557_v37 = vpop.xlane.xlu1 %1556 }
0x14d4   :  { %v1565_v3 = vsel %vm173_vm2, %v1537_v59, %v1557_v37 }
0x14d5   :  { %v1554_v1 = vpop.xlane.xlu0 %1553 }
0x14d6   :  { %v1564_v2 = vsel %vm173_vm2, %v1534_v42, %v1554_v1 }
0x14d7   :  { %v1941_v4 = vpack.c.bf16 %v1565_v3, %v1564_v2 }
0x14d9   :  { %v1540_v5 = vpop.xlane.xlu0 %1539  ;;  %1942 = vmatprep.subr.bf16.mxu1 %v1941_v4  ;;  %v1543_v7 = vpop.xlane.xlu1 %1542 }
0x14da   :  { %1944 = vmatpush3.bf16.msra.mxu1 %v1941_v4 }
0x14dd   :  { %v1560_v55 = vpop.xlane.xlu0 %1559  ;;  %v1563_v8 = vpop.xlane.xlu1 %1562 }
0x14de   :  { %v1566_v58 = vsel %vm173_vm2, %v1540_v5, %v1560_v55  ;;  %v1567_v43 = vsel %vm173_vm2, %v1543_v7, %v1563_v8 }
0x14df   :  { %v1945_v47 = vpack.c.bf16 %v1567_v43, %v1566_v58 }
0x14e1   :  { %1946 = vmatprep.subr.bf16.mxu1 %v1945_v47  ;;  %v879_v44 = vpop.permute.xlu0 %878  ;;  %v881_v10 = vpop.permute.xlu1 %880 }
0x14e2   :  { %1948 = vmatpush3.bf16.msra.mxu1 %v1945_v47  ;;  %v891_v15 = vsub.f32 %v2669_v27, %v881_v10  ;;  %v890_v61 = vsub.f32 %v2671_v33, %v879_v44 }
0x14e4   :  { %v895_v13 = vadd.f32 1e-05, %v891_v15  ;;  %v894_v49 = vadd.f32 1e-05, %v890_v61 }
0x14e5   :  { %1928 = vmatmul.mubr.msk.f32.vlgmr.msra.gmra.mrb[20].mxu1 %vm120_vm0, %v2642_v63  ;;  %v885_v11 = vpop.permute.xlu0 %884  ;;  %v883_v0 = vpop.permute.xlu1 %882 }
0x14e6   :  { %1930 = vmatprep.mubr.msk.f32.mxu1 %vm120_vm0, %v2648_v52  ;;  %v893_v9 = vsub.f32 %v2673_v35, %v885_v11  ;;  %v892_v63 = vsub.f32 %v2675_v41, %v883_v0  ;;  %2001 = vrsqrt.f32 %v895_v13 }
0x14e7   :  { %2003 = vrsqrt.f32 %v894_v49 }
0x14e8   :  { %v897_v24 = vadd.f32 1e-05, %v893_v9  ;;  %v896_v52 = vadd.f32 1e-05, %v892_v63 }
0x14e9   :  { %1931 = vmatmul.mubr.msk.f32.gmra.mrb[22].mxu1 %vm120_vm0, %v2658_v19 }
0x14ea   :  { %2005 = vrsqrt.f32 %v897_v24 }
0x14eb   :  { %2007 = vrsqrt.f32 %v896_v52 }
0x14f0   :  { %v2002_v54 = vpop.eup %2001 }
0x14f1   :  { %v2004_v56 = vpop.eup %2003  ;;  %v903_v39 = vmul.f32 %v2002_v54, %v2521_v22 }
0x14f2   :  { %v902_v46 = vmul.f32 %v2004_v56, %v2516_v21 }
0x14f4   :  { %v2006_v29 = vpop.eup %2005 }
0x14f5   :  { %v2008_v12 = vpop.eup %2007  ;;  %v905_v60 = vmul.f32 %v2006_v29, %v2535_v25 }
0x14f6   :  { %v904_v45 = vmul.f32 %v2008_v12, %v2528_v23 }
0x15b8   :  { %v2860_v19 = vpop.f32.mrb[20].mxu1 }
0x15b9   :  { %v1654_v28 = vmul.f32 %v2860_v19, %v2860_v19  ;;  %v2864_v40 = vpop.f32.mrb[21].mxu1 }
0x15ba   :  { %v1653_v31 = vmul.f32 %v2864_v40, %v2864_v40 }
0x15bb   :  { %1663 = vrot.lane.b32.xlu0 %v1654_v28, %s2161_s17 }
0x15bc   :  { %1661 = vrot.lane.b32.xlu1 %v1653_v31, %s2161_s17  ;;  %v2870_v48 = vpop.f32.mrb[22].mxu1 }
0x15bd   :  { %v1656_v50 = vmul.f32 %v2870_v48, %v2870_v48  ;;  %v2874_v14 = vpop.f32.mrb[23].mxu1 }
0x15be   :  { %v1655_v38 = vmul.f32 %v2874_v14, %v2874_v14 }
0x15bf   :  { %1667 = vrot.lane.b32.xlu0 %v1656_v50, %s2161_s17 }
0x15c0   :  { %1665 = vrot.lane.b32.xlu1 %v1655_v38, %s2161_s17  ;;  %s1819_s17 = sshll.u32 %s2177_s7, 4  ;;  %s1820_s17 = int_to_ptr.vmem [resolvable:$true] %s1819_s17 }
0x15c1   :  { %p2127_p5 = scmp.lt.s32.totalorder %s1820_s17, %s1820_s17 }
0x15c3   :  { %912 = vrot.lane.b32.xlu0 %v903_v39, %s2163_s6 }
0x15c4   :  { %910 = vrot.lane.b32.xlu1 %v902_v46, %s2163_s6 }
0x15c7   :  { %916 = vrot.lane.b32.xlu0 %v905_v60, %s2163_s6 }
0x15c8   :  { %914 = vrot.lane.b32.xlu1 %v904_v45, %s2163_s6 }
0x162d   :  { %v1664_v42 = vpop.permute.xlu0 %1663 }
0x162e   :  { %v1674_v59 = vsub.f32 %v2860_v19, %v1664_v42  ;;  %v1662_v37 = vpop.permute.xlu1 %1661  ;;  %v2987_v42 = vmov 2  }
0x162f   :  { %v1673_v1 = vsub.f32 %v2864_v40, %v1662_v37 }
0x1630   :  { %v1678_v3 = vadd.f32 1e-05, %v1674_v59 }
0x1631   :  { %v1677_v2 = vadd.f32 1e-05, %v1673_v1  ;;  %v1668_v4 = vpop.permute.xlu0 %1667 }
0x1632   :  { %2009 = vrsqrt.f32 %v1678_v3  ;;  %v1676_v5 = vsub.f32 %v2870_v48, %v1668_v4  ;;  %v1666_v7 = vpop.permute.xlu1 %1665 }
0x1633   :  { %2011 = vrsqrt.f32 %v1677_v2  ;;  %v1675_v55 = vsub.f32 %v2874_v14, %v1666_v7 }
0x1634   :  { %v1680_v8 = vadd.f32 1e-05, %v1676_v5 }
0x1635   :  { %v1679_v58 = vadd.f32 1e-05, %v1675_v55  ;;  %v913_v61 = vpop.permute.xlu0 %912 }
0x1636   :  { %2013 = vrsqrt.f32 %v1680_v8  ;;  %v911_v0 = vpop.permute.xlu1 %910  ;;  %v923_v49 = vmul.f32 %v2669_v27, %v913_v61 }
0x1637   :  { %2015 = vrsqrt.f32 %v1679_v58  ;;  %v922_v63 = vmul.f32 %v911_v0, %v2671_v33 }
0x1639   :  { %v917_v24 = vpop.permute.xlu0 %916 }
0x163a   :  { %v915_v52 = vpop.permute.xlu1 %914  ;;  %v925_v28 = vmul.f32 %v2673_v35, %v917_v24 }
0x163b   :  { %v924_v31 = vmul.f32 %v915_v52, %v2675_v41 }
0x163c   :  { %v2010_v43 = vpop.eup %2009 }
0x163d   :  { %v2012_v47 = vpop.eup %2011  ;;  %v1686_v44 = vmul.f32 %v2010_v43, %v2521_v22 }
0x163e   :  { %v1685_v10 = vmul.f32 %v2012_v47, %v2516_v21 }
0x163f   :  { %1695 = vrot.lane.b32.xlu0 %v1686_v44, %s2163_s6 }
0x1640   :  { %v2014_v15 = vpop.eup %2013  ;;  %1693 = vrot.lane.b32.xlu1 %v1685_v10, %s2163_s6 }
0x1641   :  { %v2016_v11 = vpop.eup %2015  ;;  %v1688_v13 = vmul.f32 %v2014_v15, %v2535_v25 }
0x1642   :  { %v1687_v9 = vmul.f32 %v2016_v11, %v2528_v23 }
0x1643   :  { %1699 = vrot.lane.b32.xlu0 %v1688_v13, %s2163_s6 }
0x1644   :  { %1697 = vrot.lane.b32.xlu1 %v1687_v9, %s2163_s6  ;;  %s2122_s6 = scalar_lea.vmem %s1820_s17, 2048 }
0x1645   :  { %p2123_p4 = scmp.ne.s32.totalorder %s1820_s17, %s2122_s6  ;;  %p2128_p6 = scmp.lt.s32.totalorder %s2122_s6, %s2122_s6 }
0x1647   :  { %932 = vrot.lane.b32.xlu0 %v923_v49, %s2164_s18  ;;  %p2129_p7 = por %p2128_p6, %p2127_p5 }
0x1648   :  { %930 = vrot.lane.b32.xlu1 %v922_v63, %s2164_s18  ;;  %v2019_v63 = vld [vmem:[#allocation3 + $0x8] sm:$0xff] }
0x1649   :  { %p2130_p8 = pnand %p2129_p7, %p2123_p4 }
0x164b   :  { %936 = vrot.lane.b32.xlu0 %v925_v28, %s2164_s18 }
0x164c   :  { %934 = vrot.lane.b32.xlu1 %v924_v31, %s2164_s18 }
0x16b1   :  { %v1696_v50 = vpop.permute.xlu0 %1695 }
0x16b2   :  { %v1706_v54 = vmul.f32 %v2860_v19, %v1696_v50  ;;  %v1694_v27 = vpop.permute.xlu1 %1693 }
0x16b3   :  { %v1705_v33 = vmul.f32 %v1694_v27, %v2864_v40 }
0x16b4   :  { %1715 = vrot.lane.b32.xlu0 %v1706_v54, %s2164_s18 }
0x16b5   :  { %v1700_v38 = vpop.permute.xlu0 %1699  ;;  %1713 = vrot.lane.b32.xlu1 %v1705_v33, %s2164_s18  ;;  %v2021_v33 = vld [vmem:[#allocation3 + $0x38] sm:$0xff] }
0x16b6   :  { %v1708_v56 = vmul.f32 %v2870_v48, %v1700_v38  ;;  %v1698_v35 = vpop.permute.xlu1 %1697 }
0x16b7   :  { %v1707_v41 = vmul.f32 %v1698_v35, %v2874_v14 }
0x16b8   :  { %1719 = vrot.lane.b32.xlu0 %v1708_v56, %s2164_s18 }
0x16b9   :  { %1717 = vrot.lane.b32.xlu1 %v1707_v41, %s2164_s18  ;;  %v933_v19 = vpop.permute.xlu0 %932 }
0x16ba   :  { %v931_v40 = vpop.permute.xlu1 %930  ;;  %v943_v14 = vsub.f32 %v2521_v22, %v933_v19 }
0x16bb   :  { %v942_v29 = vsub.f32 %v2516_v21, %v931_v40 }
0x16bc   :  { %951 = vperm.xlu0 %1988, %v903_v39  }
0x16bd   :  { %947 = vperm.xlu1 %1987, %v902_v46   ;;  %v937_v12 = vpop.permute.xlu0 %936 }
0x16be   :  { %v945_v48 = vsub.f32 %v2535_v25, %v937_v12  ;;  %v935_v39 = vpop.permute.xlu1 %934 }
0x16bf   :  { %v944_v46 = vsub.f32 %v2528_v23, %v935_v39 }
0x16c0   :  { %1730 = vperm.xlu0 %1988, %v1685_v10  }
0x16c1   :  { %955 = vperm.xlu1 %1987, %v904_v45  }
0x16c4   :  { %1738 = vperm.xlu0 %1988, %v1687_v9   ;;  %v2018_v9 = vld [vmem:[#allocation3] sm:$0xff] }
0x16c5   :  { %959 = vperm.xlu1 %1987, %v905_v60  }
0x16c8   :  { %1989 = vset.pattern.permute.xlu0 %v2987_v42 }
0x16c9   :  { %1734 = vperm.xlu1 %1987, %v1686_v44   ;;  %972 = vperm.xlu0 %1989, %v942_v29   ;;  %v2988_v29 = vld [vmem:[#allocation16_spill] sm:$0xff] }
0x16cd   :  { %1742 = vperm.xlu1 %1987, %v1688_v13   ;;  %987 = vperm.xlu0 %1989, %v945_v48  }
0x16d1   :  { %1990 = vset.pattern.permute.xlu1 %v2987_v42  ;;  %v2989_v42 = vld [vmem:[#allocation17_spill] sm:$0xff] }
0x16d2   :  { %977 = vperm.xlu1 %1990, %v943_v14  }
0x16d6   :  { %982 = vperm.xlu1 %1990, %v944_v46  }
0x1726   :  { %v1716_v60 = vpop.permute.xlu0 %1715 }
0x1727   :  { %v1726_v45 = vsub.f32 %v2521_v22, %v1716_v60  ;;  %v1714_v59 = vpop.permute.xlu1 %1713  ;;  %v2023_v60 = vld [vmem:[#allocation3 + $0x18] sm:$0xff] }
0x1728   :  { %v1725_v37 = vsub.f32 %v2516_v21, %v1714_v59 }
0x1729   :  { %1760 = vperm.xlu0 %1989, %v1726_v45  }
0x172a   :  { %v1720_v1 = vpop.permute.xlu0 %1719  ;;  %1755 = vperm.xlu1 %1990, %v1725_v37  }
0x172b   :  { %v1728_v3 = vsub.f32 %v2535_v25, %v1720_v1  ;;  %v1718_v2 = vpop.permute.xlu1 %1717 }
0x172c   :  { %v1727_v4 = vsub.f32 %v2528_v23, %v1718_v2 }
0x172d   :  { %1770 = vperm.xlu0 %1989, %v1728_v3  }
0x172e   :  { %1765 = vperm.xlu1 %1990, %v1727_v4  }
0x173b   :  { %v952_v5 = vpop.permute.xlu0 %951 }
0x173c   :  { %v948_v7 = vpop.permute.xlu1 %947  ;;  %v964_v54 = vmul.f32 %v952_v5, %v2571_v32 }
0x173d   :  { %v962_v21 = vmul.f32 %v948_v7, %v2565_v16  ;;  %v963_v43 = vmul.f32 %v948_v7, %v2568_v20 }
0x173f   :  { %v2926_v55 = vpop.permute.xlu0 %1730 }
0x1740   :  { %v956_v8 = vpop.permute.xlu1 %955 }
0x1741   :  { %v966_v12 = vmul.f32 %v956_v8, %v2988_v29  ;;  %v967_v48 = vmul.f32 %v956_v8, %v2989_v42  ;;  %v2025_v8 = vld [vmem:[#allocation3 + $0x28] sm:$0xff] }
0x1743   :  { %v2928_v58 = vpop.permute.xlu0 %1738 }
0x1744   :  { %v960_v22 = vpop.permute.xlu1 %959 }
0x1745   :  { %v968_v23 = vmul.f32 %v960_v22, %v2599_v62  ;;  %v969_v15 = vmul.f32 %v960_v22, %v2602_v6  ;;  %v965_v62 = vmul.f32 %v952_v5, %v2576_v34  ;;  %v2020_v6 = vld [vmem:[#allocation3 + $0x30] sm:$0xff]  ;;  %v2024_v5 = vld [vmem:[#allocation3 + $0x20] sm:$0xff] }
0x1746   :  { %v2022_v34 = vld [vmem:[#allocation3 + $0x10] sm:$0xff] }
0x1748   :  { %v973_v47 = vpop.permute.xlu0 %972  ;;  %v1735_v44 = vpop.permute.xlu1 %1734 }
0x1749   :  { %v990_v25 = vadd.f32 %v973_v47, %v962_v21  ;;  %v991_v10 = vadd.f32 %v973_v47, %v963_v43  ;;  %v1747_v47 = vmul.f32 %v1735_v44, %v2793_v17 }
0x174b   :  { %v998_v61 = vmax.f32 %v990_v25, 0.0  ;;  %v999_v11 = vmax.f32 %v991_v10, 0.0  ;;  %v1748_v25 = vmul.f32 %v1735_v44, %v2796_v51  ;;  %v1745_v10 = vmul.f32 %v2926_v55, %v2787_v57 }
0x174c   :  { %v988_v0 = vpop.permute.xlu0 %987  ;;  %v1743_v13 = vpop.permute.xlu1 %1742  ;;  %v1749_v51 = vmul.f32 %v2928_v58, %v2811_v26  ;;  %v1750_v57 = vmul.f32 %v2928_v58, %v2814_v36 }
0x174d   :  { %v1006_v49 = vadd.f32 %v2018_v9, %v998_v61  ;;  %v1007_v24 = vadd.f32 %v2019_v63, %v999_v11  ;;  %v996_v52 = vadd.f32 %v988_v0, %v968_v23  ;;  %v997_v16 = vadd.f32 %v988_v0, %v969_v15 }
0x174e   :  { %v1746_v23 = vmul.f32 %v2926_v55, %v2790_v18  ;;  %v1751_v63 = vmul.f32 %v1743_v13, %v2817_v30 }
0x174f   :  { %v1014_v28 = vmax.f32 %v1006_v49, 0.0  ;;  %v1015_v20 = vmax.f32 %v1007_v24, 0.0  ;;  %v1004_v31 = vmax.f32 %v996_v52, 0.0  ;;  %v1005_v50 = vmax.f32 %v997_v16, 0.0  ;;  %v2026_v16 = vld [vmem:[#allocation3 + $0x50] sm:$0xff] }
0x1750   :  { %v1752_v24 = vmul.f32 %v1743_v13, %v2820_v53  ;;  %v2029_v13 = vld [vmem:[#allocation3 + $0x48] sm:$0xff] }
0x1751   :  { %1022 = vst [vmem:[#allocation11] sm:$0xff] %v1014_v28  ;;  %1023 = vst [vmem:[#allocation11 + $0x8] sm:$0xff] %v1015_v20  ;;  %v1012_v27 = vadd.f32 %v2020_v6, %v1004_v31  ;;  %v1013_v38 = vadd.f32 %v2021_v33, %v1005_v50  ;;  %v978_v56 = vpop.permute.xlu1 %977  ;;  %v2027_v20 = vld [vmem:[#allocation3 + $0x58] sm:$0xff] }
0x1752   :  { %v992_v35 = vadd.f32 %v978_v56, %v964_v54  ;;  %v993_v41 = vadd.f32 %v978_v56, %v965_v62  ;;  %v2028_v62 = vld [vmem:[#allocation3 + $0x40] sm:$0xff] }
0x1753   :  { %v1020_v19 = vmax.f32 %v1012_v27, 0.0  ;;  %v1021_v40 = vmax.f32 %v1013_v38, 0.0 }
0x1754   :  { %v1000_v14 = vmax.f32 %v992_v35, 0.0  ;;  %v1001_v39 = vmax.f32 %v993_v41, 0.0 }
0x1755   :  { %1028 = vst [vmem:[#allocation11 + $0x30] sm:$0xff] %v1020_v19  ;;  %1029 = vst [vmem:[#allocation11 + $0x38] sm:$0xff] %v1021_v40  ;;  %v983_v32 = vpop.permute.xlu1 %982  ;;  %v2030_v40 = vld [vmem:[#allocation3 + $0x70] sm:$0xff] }
0x1756   :  { %v1008_v46 = vadd.f32 %v2022_v34, %v1000_v14  ;;  %v1009_v45 = vadd.f32 %v2023_v60, %v1001_v39  ;;  %v994_v59 = vadd.f32 %v983_v32, %v966_v12  ;;  %v995_v37 = vadd.f32 %v983_v32, %v967_v48  ;;  %v2031_v12 = vld [vmem:[#allocation3 + $0x78] sm:$0xff]  ;;  %v2032_v48 = vld [vmem:[#allocation3 + $0x60] sm:$0xff]  ;;  %v2033_v39 = vld [vmem:[#allocation3 + $0x68] sm:$0xff] }
0x1758   :  { %v1016_v1 = vmax.f32 %v1008_v46, 0.0  ;;  %v1017_v3 = vmax.f32 %v1009_v45, 0.0  ;;  %v1002_v2 = vmax.f32 %v994_v59, 0.0  ;;  %v1003_v4 = vmax.f32 %v995_v37, 0.0 }
0x175a   :  { %1024 = vst [vmem:[#allocation11 + $0x10] sm:$0xff] %v1016_v1  ;;  %1025 = vst [vmem:[#allocation11 + $0x18] sm:$0xff] %v1017_v3  ;;  %v1010_v7 = vadd.f32 %v2024_v5, %v1002_v2  ;;  %v1011_v22 = vadd.f32 %v2025_v8, %v1003_v4 }
0x175c   :  { %v1018_v21 = vmax.f32 %v1010_v7, 0.0  ;;  %v1019_v43 = vmax.f32 %v1011_v22, 0.0 }
0x175e   :  { %1026 = vst [vmem:[#allocation11 + $0x20] sm:$0xff] %v1018_v21  ;;  %1027 = vst [vmem:[#allocation11 + $0x28] sm:$0xff] %v1019_v43 }
0x17a8   :  { %v1761_v15 = vpop.permute.xlu0 %1760 }
0x17a9   :  { %v1775_v61 = vadd.f32 %v1761_v15, %v1747_v47  ;;  %v1776_v11 = vadd.f32 %v1761_v15, %v1748_v25  ;;  %v1756_v0 = vpop.permute.xlu1 %1755 }
0x17aa   :  { %v1773_v9 = vadd.f32 %v1756_v0, %v1745_v10  ;;  %v1774_v49 = vadd.f32 %v1756_v0, %v1746_v23 }
0x17ab   :  { %v1783_v52 = vmax.f32 %v1775_v61, 0.0  ;;  %v1784_v17 = vmax.f32 %v1776_v11, 0.0 }
0x17ac   :  { %v1781_v44 = vmax.f32 %v1773_v9, 0.0  ;;  %v1782_v18 = vmax.f32 %v1774_v49, 0.0  ;;  %v1771_v55 = vpop.permute.xlu0 %1770 }
0x17ad   :  { %v1791_v28 = vadd.f32 %v2026_v16, %v1783_v52  ;;  %v1792_v31 = vadd.f32 %v2027_v20, %v1784_v17  ;;  %v1779_v50 = vadd.f32 %v1771_v55, %v1751_v63  ;;  %v1780_v54 = vadd.f32 %v1771_v55, %v1752_v24  ;;  %v1766_v30 = vpop.permute.xlu1 %1765 }
0x17ae   :  { %v1789_v53 = vadd.f32 %v2028_v62, %v1781_v44  ;;  %v1790_v6 = vadd.f32 %v2029_v13, %v1782_v18  ;;  %v1777_v27 = vadd.f32 %v1766_v30, %v1749_v51  ;;  %v1778_v33 = vadd.f32 %v1766_v30, %v1750_v57 }
0x17af   :  { %v1799_v26 = vmax.f32 %v1791_v28, 0.0  ;;  %v1800_v38 = vmax.f32 %v1792_v31, 0.0  ;;  %v1787_v56 = vmax.f32 %v1779_v50, 0.0  ;;  %v1788_v36 = vmax.f32 %v1780_v54, 0.0 }
0x17b0   :  { %v1797_v58 = vmax.f32 %v1789_v53, 0.0  ;;  %v1798_v35 = vmax.f32 %v1790_v6, 0.0  ;;  %v1785_v41 = vmax.f32 %v1777_v27, 0.0  ;;  %v1786_v19 = vmax.f32 %v1778_v33, 0.0 }
0x17b1   :  { %1808 = vst [vmem:[#allocation11 + $0x50] sm:$0xff] %v1799_v26  ;;  %1809 = vst [vmem:[#allocation11 + $0x58] sm:$0xff] %v1800_v38  ;;  %v1795_v29 = vadd.f32 %v2030_v40, %v1787_v56  ;;  %v1796_v42 = vadd.f32 %v2031_v12, %v1788_v36 }
0x17b2   :  { %1806 = vst [vmem:[#allocation11 + $0x40] sm:$0xff] %v1797_v58  ;;  %1807 = vst [vmem:[#allocation11 + $0x48] sm:$0xff] %v1798_v35  ;;  %v1793_v14 = vadd.f32 %v2032_v48, %v1785_v41  ;;  %v1794_v32 = vadd.f32 %v2033_v39, %v1786_v19 }
0x17b3   :  { %v1803_v34 = vmax.f32 %v1795_v29, 0.0  ;;  %v1804_v46 = vmax.f32 %v1796_v42, 0.0 }
0x17b4   :  { %v1801_v60 = vmax.f32 %v1793_v14, 0.0  ;;  %v1802_v45 = vmax.f32 %v1794_v32, 0.0 }
0x17b5   :  { %1812 = vst [vmem:[#allocation11 + $0x70] sm:$0xff] %v1803_v34  ;;  %1813 = vst [vmem:[#allocation11 + $0x78] sm:$0xff] %v1804_v46 }
0x17b6   :  { %1810 = vst [vmem:[#allocation11 + $0x60] sm:$0xff] %v1801_v60  ;;  %1811 = vst [vmem:[#allocation11 + $0x68] sm:$0xff] %v1802_v45 }
0x17b7   :  { %2133 = shalt.err (!%p2130_p8)
}
0x17b8   :  { %s2134_s20 = scalar_lea.hbm %s2974_s9, 2048 }
0x17b9   :  { %p2135_p9 = scmp.ne.s32.totalorder %s2974_s9, %s2134_s20  ;;  %p2138_p10 = scmp.lt.u32.totalorder %s2134_s20, %s2974_s9 }
0x17bb   :  { %p2140_p11 = pnand %p2138_p10, %p2135_p9 }
0x17bd   :  { %2143 = shalt.err (!%p2140_p11)
}
0x17be   :  { %1825 = dma.vmem_to_hbm [thread:$0]  %s1820_s17, 2048, %s2974_s9, [#allocation5], %s2154_s1, %s2154_s1, %s2155_s10  }
0x17bf   :  { %2150 = dma.done.wait [#allocation5], 2048  }
0x17c0   :  { %2151 = vsyncadd [#allocation5], 4294965248 }
0x17c1   :  { %1829 = vsyncpa [#allocation4], 1 }
0x17c2   :  { %1830 = vsyncpa [#allocation7], 1 }
0x17c3   :  { %1831 = vsyncpa [#allocation10], 1 }
0x17c4   :  { %1832 = vsyncpa [#allocation5], 1 }

</bundles_post_ra>
